<compile_context>
chip_gen: v5e
topology: v5e:2x2
jax: 0.10.0
libtpu: 0.0.40
codegen_flags: <defaults>
</compile_context>

<pallas_src>
import functools

import numpy as np

import jax
import jax.numpy as jnp
from jax.experimental import pallas as pl
from jax.experimental.pallas import tpu as pltpu


# -----------------------------------------------------------------------------
# Pallas kernel: per word-block of TB words
#   1) fused embedding-gather + input projection (one-hot @ proj), hoisted
#   2) serial LSTM recurrence (length-masked, packed-sequence semantics)
#      with sigmoid attention + masked time-sum folded into the loop
# -----------------------------------------------------------------------------
def _char_lstm_attn_kernel(chars_ref,   # (T, TB)     int32  time-major char ids
                           lens_ref,    # (TB, 1)     int32  word lengths
                           proj_ref,    # (Vp, 4H)    bf16   char_emb @ W_ih^T (V lane-padded)
                           whh_t_ref,   # (H, 4H)     bf16   W_hh^T
                           bias_ref,    # (1, 4H)     f32    b_ih + b_hh
                           h0_ref,      # (1, H)      f32
                           c0_ref,      # (1, H)      f32
                           attn_ref,    # (1, H)      f32    char_attn weight row
                           out_ref,     # (TB, H)     f32    sum_t h_t*sigmoid(<h_t,a>)
                           gx_ref):     # (T, TB, 4H) bf16   scratch: input gates
    T, TB = chars_ref.shape
    Vp = proj_ref.shape[0]
    H = out_ref.shape[1]
    G = 4 * H

    # ---- hoisted: embedding gather + input projection as ONE bf16 matmul ---
    ids = chars_ref[...]                                            # (T, TB) i32
    onehot = (ids[:, :, None] ==
              jax.lax.broadcasted_iota(jnp.int32, (T, TB, Vp), 2)
              ).astype(jnp.bfloat16)                                # (T, TB, Vp) bf16
    gx = jnp.dot(onehot.reshape(T * TB, Vp), proj_ref[...],
                 preferred_element_type=jnp.float32)                # (T*TB, 4H) f32
    gx_ref[...] = (gx + bias_ref[...]).astype(jnp.bfloat16).reshape(T, TB, G)

    whh_t = whh_t_ref[...]                                          # (H, 4H) bf16
    lens = lens_ref[...]                                            # (TB, 1) i32
    attn = attn_ref[...]                                            # (1, H)  f32
    h0 = jnp.broadcast_to(h0_ref[...], (TB, H))
    c0 = jnp.broadcast_to(c0_ref[...], (TB, H))
    acc0 = jnp.zeros((TB, H), jnp.float32)

    # ---- serial recurrence: one bf16 (TB,H)@(H,4H) matmul + gates per step -
    # h/c past a word's length are never read (acc is masked per step), so no
    # freeze-selects are needed; state just keeps evolving on padded chars.
    def step(t, carry):
        h, c, acc = carry
        gates = (gx_ref[t].astype(jnp.float32) +
                 jnp.dot(h.astype(jnp.bfloat16), whh_t,
                         preferred_element_type=jnp.float32))       # (TB, 4H)
        i_g = jax.nn.sigmoid(gates[:, 0 * H:1 * H])
        f_g = jax.nn.sigmoid(gates[:, 1 * H:2 * H])
        g_g = jnp.tanh(gates[:, 2 * H:3 * H])
        o_g = jax.nn.sigmoid(gates[:, 3 * H:4 * H])

        c_new = f_g * c + i_g * g_g
        h_new = o_g * jnp.tanh(c_new)

        # attention + masked accumulate, on XLU/EUP/VALU slack under the MXU step
        score = jnp.sum(h_new * attn, axis=-1, keepdims=True)       # (TB, 1)
        w = jax.nn.sigmoid(score)
        valid = t < lens                                            # (TB, 1) bool
        acc = acc + jnp.where(valid, w * h_new, 0.0)
        return (h_new, c_new, acc)

    _, _, acc = jax.lax.fori_loop(0, T, step, (h0, c0, acc0),
                                  unroll=min(T, 8))                 # bounded unroll

    out_ref[...] = acc


def _pick_tb(B, T, H, block_b):
    """Word-block size: VMEM-budgeted, lane-aligned when multi-block, >=2 blocks
    for large B so v7x megacore sharding has work."""
    B8 = ((B + 7) // 8) * 8
    # bf16 gates_x scratch dominates VMEM: T*TB*4H*2 bytes <= ~20 MiB.
    gx_cap = (20 * 1024 * 1024) // max(1, T * 4 * H * 2)
    tb = min(block_b, max(8, gx_cap))
    if B > 128:
        tb = min(tb, -(-B // 2))            # aim for >= 2 grid blocks (megacore)
    if tb >= B8:
        return B8                           # single block: TB == padded B (any mult of 8)
    # multi-block: chars block (T, TB) puts TB on lanes -> must be a 128 multiple
    return max(128, ((tb + 127) // 128) * 128)


def char_lstm_attn(chars, wordlens, char_emb, w_ih, w_hh, b_ih, b_hh,
                   h_init, c_init, attn_w, *, block_b=256):
    """chars: (B, T) int32; wordlens: (B,) int32; returns (B, H) fp32."""
    B, T = chars.shape
    H = w_hh.shape[1]
    V = char_emb.shape[0]
    Vp = ((V + 127) // 128) * 128           # lane-pad vocab for dense one-hot/matmul

    # Fused gather+projection table: one_hot(chars) @ (char_emb @ W_ih^T), bf16.
    proj = jnp.dot(char_emb.astype(jnp.float32),
                   jnp.transpose(w_ih).astype(jnp.float32))         # (V, 4H) f32
    proj = jnp.pad(proj, ((0, Vp - V), (0, 0))).astype(jnp.bfloat16)  # (Vp, 4H) bf16

    TB = _pick_tb(B, T, H, block_b)
    nb = pl.cdiv(B, TB)
    Bp = nb * TB

    chars_tm = jnp.transpose(chars.astype(jnp.int32))               # (T, B)
    lens = wordlens.astype(jnp.int32)
    if Bp != B:
        chars_tm = jnp.pad(chars_tm, ((0, 0), (0, Bp - B)))
        lens = jnp.pad(lens, (0, Bp - B))                           # len 0 -> all-masked
    lens = lens.reshape(Bp, 1)

    args = (
        chars_tm,                                                   # (T, Bp) i32
        lens,                                                       # (Bp, 1) i32
        proj,                                                       # (Vp, 4H) bf16
        jnp.transpose(w_hh).astype(jnp.bfloat16),                   # (H, 4H) bf16
        (b_ih + b_hh).astype(jnp.float32).reshape(1, 4 * H),        # (1, 4H)
        h_init.astype(jnp.float32).reshape(1, H),                   # (1, H)
        c_init.astype(jnp.float32).reshape(1, H),                   # (1, H)
        attn_w.astype(jnp.float32).reshape(1, H),                   # (1, H)
    )

    # Explicit VMEM budget for this block size (bf16 gx + double-buffered I/O + weights).
    gx_bytes = T * TB * 4 * H * 2
    io_bytes = 2 * (T * TB * 4 + TB * 4 + TB * H * 4)
    wt_bytes = 2 * (Vp * 4 * H * 2 + H * 4 * H * 2 + (4 * H + 3 * H) * 4)
    need = gx_bytes + io_bytes + wt_bytes + (4 << 20)
    vmem_limit = int(min(60 << 20, max(need, 24 << 20)))            # < v7x 64 MiB physical

    grid_spec = pltpu.PrefetchScalarGridSpec(
        num_scalar_prefetch=0,
        grid=(nb,),
        in_specs=[
            pl.BlockSpec((T, TB), lambda i: (0, i)),                # chars (time-major)
            pl.BlockSpec((TB, 1), lambda i: (i, 0)),                # lens
            pl.BlockSpec((Vp, 4 * H), lambda i: (0, 0)),            # proj
            pl.BlockSpec((H, 4 * H), lambda i: (0, 0)),             # whh_t
            pl.BlockSpec((1, 4 * H), lambda i: (0, 0)),             # bias
            pl.BlockSpec((1, H), lambda i: (0, 0)),                 # h0
            pl.BlockSpec((1, H), lambda i: (0, 0)),                 # c0
            pl.BlockSpec((1, H), lambda i: (0, 0)),                 # attn
        ],
        out_specs=pl.BlockSpec((TB, H), lambda i: (i, 0)),
        scratch_shapes=[
            pltpu.VMEM((T, TB, 4 * H), jnp.bfloat16),               # gates_x (bf16)
        ],
    )

    out = pl.pallas_call(
        _char_lstm_attn_kernel,
        out_shape=jax.ShapeDtypeStruct((Bp, H), jnp.float32),
        grid_spec=grid_spec,
        compiler_params=pltpu.CompilerParams(
            dimension_semantics=("parallel",),
            vmem_limit_bytes=vmem_limit),
    )(*args)
    return out[:B]


# -----------------------------------------------------------------------------
# Full CharacterModel forward (attention=True, bidirectional=False, pad=True,
# char_num_layers=1). Dropout is identity (eval mode).
# -----------------------------------------------------------------------------
# TODO(synk): dropout (self.dropout, rec_dropout) is identity here — eval-mode.
def character_model_forward(params, chars, chars_mask, word_orig_idx,
                            sentlens, wordlens):
    del chars_mask  # only wordlens carry the packed-sequence semantics
    B = chars.shape[0]
    H = params["w_hh"].shape[1]

    res_sorted = char_lstm_attn(
        chars, wordlens,
        params["char_emb"], params["w_ih"], params["w_hh"],
        params["b_ih"], params["b_hh"],
        params["h0"].reshape(1, H), params["c0"].reshape(1, H),
        params["attn_w"],
    )                                                   # (B, H) words sorted by len

    # tensor_unsort: restore original word order (scatter, no argsort).
    oidx = jnp.asarray(word_orig_idx)
    res = jnp.zeros_like(res_sorted).at[oidx].set(res_sorted)      # (B, H)

    # pack_sequence(res.split(sentlens)) + pad_packed_sequence(batch_first=True)
    # as a single gather + mask (sentlens is static Python metadata).
    sentlens = tuple(int(s) for s in sentlens)
    S = len(sentlens)
    max_sl = max(sentlens)
    offs = np.cumsum([0] + list(sentlens[:-1]))
    pos = np.arange(max_sl)[None, :]
    sl = np.asarray(sentlens)[:, None]
    mask = pos < sl                                     # (S, max_sl) bool
    flat = np.minimum(offs[:, None] + pos, B - 1)       # (S, max_sl) int
    out = jnp.where(jnp.asarray(mask)[:, :, None],
                    res[jnp.asarray(flat)], 0.0)        # (S, max_sl, H)
    return out


# -----------------------------------------------------------------------------
# Deterministic parameter construction (mirrors nn.Module __init__ shapes).
# -----------------------------------------------------------------------------
def init_params(key, vocab_size, emb_dim, hidden_dim):
    ks = jax.random.split(key, 5)
    scale = 0.1
    char_emb = scale * jax.random.normal(ks[0], (vocab_size, emb_dim), jnp.float32)
    char_emb = char_emb.at[0].set(0.0)                  # padding_idx=0
    return {
        "char_emb": char_emb,
        "w_ih": scale * jax.random.normal(ks[1], (4 * hidden_dim, emb_dim), jnp.float32),
        "w_hh": scale * jax.random.normal(ks[2], (4 * hidden_dim, hidden_dim), jnp.float32),
        "b_ih": scale * jax.random.normal(ks[3], (4 * hidden_dim,), jnp.float32),
        "b_hh": scale * jax.random.normal(ks[4], (4 * hidden_dim,), jnp.float32),
        # module does self.char_attn.weight.data.zero_()
        "attn_w": jnp.zeros((1, hidden_dim), jnp.float32),
        # nn.Parameter(torch.zeros(num_dir*num_layers, 1, hidden))
        "h0": jnp.zeros((1, 1, hidden_dim), jnp.float32),
        "c0": jnp.zeros((1, 1, hidden_dim), jnp.float32),
    }


if __name__ == "__main__":
    key = jax.random.PRNGKey(0)

    VOCAB = 40          # len(vocab['char'])
    EMB = 32            # char_emb_dim
    HID = 32            # char_hidden_dim
    B = 8               # number of words in the batch (flattened over sentences)
    T = 8               # max word length (chars per word)

    k_par, k_chr, k_perm = jax.random.split(key, 3)
    params = init_params(k_par, VOCAB, EMB, HID)

    # Word lengths must be decreasing (pack_padded_sequence enforce_sorted=True).
    wordlens = jnp.array([8, 7, 6, 5, 4, 3, 3, 2], jnp.int32)
    # Character ids: valid positions in [1, VOCAB-1], 0 padding past wordlen.
    raw = jax.random.randint(k_chr, (B, T), 1, VOCAB, jnp.int32)
    pos = jnp.arange(T)[None, :]
    chars = jnp.where(pos < wordlens[:, None], raw, 0)
    chars_mask = (chars == 0)

    # Original indices of the (length-)sorted words (a permutation of 0..B-1).
    word_orig_idx = jax.random.permutation(k_perm, jnp.arange(B, dtype=jnp.int32))

    # Sentence lengths (decreasing, sum == B); pad=True behaviour.
    sentlens = (5, 3)

    fwd = jax.jit(functools.partial(character_model_forward, sentlens=sentlens))
    out = fwd(params, chars, chars_mask, word_orig_idx, wordlens=wordlens)
    out = jax.block_until_ready(out)

    assert out.shape == (len(sentlens), max(sentlens), HID), out.shape
    assert bool(jnp.all(jnp.isfinite(out)))
    print("KERNEL_OK")
</pallas_src>

<mosaic_0001>
module attributes {stable_mosaic.version = 11 : i64} {
  func.func @_char_lstm_attn_kernel(%arg0: i32, %arg1: memref<8x8xi32, #tpu.memory_space<vmem>>, %arg2: memref<8x1xi32, #tpu.memory_space<vmem>>, %arg3: memref<128x128xbf16, #tpu.memory_space<vmem>>, %arg4: memref<32x128xbf16, #tpu.memory_space<vmem>>, %arg5: memref<1x128xf32, #tpu.memory_space<vmem>>, %arg6: memref<1x32xf32, #tpu.memory_space<vmem>>, %arg7: memref<1x32xf32, #tpu.memory_space<vmem>>, %arg8: memref<1x32xf32, #tpu.memory_space<vmem>>, %arg9: memref<8x32xf32, #tpu.memory_space<vmem>>, %arg10: memref<8x8x128xbf16, #tpu.memory_space<vmem>>) attributes {dimension_semantics = [#tpu.dimension_semantics<parallel>], iteration_bounds = array<i64: 1>, scalar_prefetch = 0 : i64, scratch_operands = 1 : i64, tpu.core_type = #tpu.core_type<tc>, window_params = [{transform_indices = @transform_0, window_bounds = array<i64: 8, 8>}, {transform_indices = @transform_1, window_bounds = array<i64: 8, 1>}, {pipeline_mode = #tpu.pipeline_mode<synchronous>, transform_indices = @transform_2, window_bounds = array<i64: 128, 128>}, {pipeline_mode = #tpu.pipeline_mode<synchronous>, transform_indices = @transform_3, window_bounds = array<i64: 32, 128>}, {pipeline_mode = #tpu.pipeline_mode<synchronous>, transform_indices = @transform_4, window_bounds = array<i64: 1, 128>}, {pipeline_mode = #tpu.pipeline_mode<synchronous>, transform_indices = @transform_5, window_bounds = array<i64: 1, 32>}, {pipeline_mode = #tpu.pipeline_mode<synchronous>, transform_indices = @transform_6, window_bounds = array<i64: 1, 32>}, {pipeline_mode = #tpu.pipeline_mode<synchronous>, transform_indices = @transform_7, window_bounds = array<i64: 1, 32>}, {transform_indices = @transform_8, window_bounds = array<i64: 8, 32>}]} {
    %c0 = arith.constant 0 : index
    %c0_0 = arith.constant 0 : index
    %0 = vector.load %arg1[%c0, %c0_0] : memref<8x8xi32, #tpu.memory_space<vmem>>, vector<8x8xi32>
    %1 = vector.shape_cast %0 : vector<8x8xi32> to vector<8x8x1xi32>
    %2 = tpu.iota {dimensions = array<i32: 2>} : vector<8x8x128xi32>
    %3 = vector.broadcast %1 : vector<8x8x1xi32> to vector<8x8x128xi32>
    %4 = arith.cmpi eq, %3, %2 : vector<8x8x128xi32>
    %5 = arith.extui %4 : vector<8x8x128xi1> to vector<8x8x128xi32>
    %6 = arith.sitofp %5 : vector<8x8x128xi32> to vector<8x8x128xf32>
    %7 = arith.truncf %6 : vector<8x8x128xf32> to vector<8x8x128xbf16>
    %8 = vector.shape_cast %7 : vector<8x8x128xbf16> to vector<64x128xbf16>
    %c0_1 = arith.constant 0 : index
    %c0_2 = arith.constant 0 : index
    %9 = vector.load %arg3[%c0_1, %c0_2] : memref<128x128xbf16, #tpu.memory_space<vmem>>, vector<128x128xbf16>
    %cst = arith.constant dense<0.000000e+00> : vector<64x128xf32>
    %10 = tpu.matmul %8, %9, %cst {dimension_numbers = #tpu.dot_dimension_numbers<[1], [0], [0], [1], [0, 0, 1, 1], [], []>} : vector<64x128xbf16>, vector<128x128xbf16>, vector<64x128xf32> -> vector<64x128xf32>
    %c0_3 = arith.constant 0 : index
    %c0_4 = arith.constant 0 : index
    %11 = vector.load %arg5[%c0_3, %c0_4] : memref<1x128xf32, #tpu.memory_space<vmem>>, vector<1x128xf32>
    %12 = vector.broadcast %11 : vector<1x128xf32> to vector<64x128xf32>
    %13 = arith.addf %10, %12 : vector<64x128xf32>
    %14 = arith.truncf %13 : vector<64x128xf32> to vector<64x128xbf16>
    %15 = vector.shape_cast %14 : vector<64x128xbf16> to vector<8x8x128xbf16>
    %c0_5 = arith.constant 0 : index
    %c0_6 = arith.constant 0 : index
    %c0_7 = arith.constant 0 : index
    %16 = vector.load %arg10[%c0_5, %c0_6, %c0_7] : memref<8x8x128xbf16, #tpu.memory_space<vmem>>, vector<8x8x128xbf16>
    tpu.vector_store %arg10[%c0_5, %c0_6, %c0_7], %15 {strides = array<i32>} : memref<8x8x128xbf16, #tpu.memory_space<vmem>>, vector<8x8x128xbf16>,
    %c0_8 = arith.constant 0 : index
    %c0_9 = arith.constant 0 : index
    %17 = vector.load %arg4[%c0_8, %c0_9] : memref<32x128xbf16, #tpu.memory_space<vmem>>, vector<32x128xbf16>
    %c0_10 = arith.constant 0 : index
    %c0_11 = arith.constant 0 : index
    %18 = vector.load %arg2[%c0_10, %c0_11] : memref<8x1xi32, #tpu.memory_space<vmem>>, vector<8x1xi32>
    %c0_12 = arith.constant 0 : index
    %c0_13 = arith.constant 0 : index
    %19 = vector.load %arg8[%c0_12, %c0_13] : memref<1x32xf32, #tpu.memory_space<vmem>>, vector<1x32xf32>
    %c0_14 = arith.constant 0 : index
    %c0_15 = arith.constant 0 : index
    %20 = vector.load %arg6[%c0_14, %c0_15] : memref<1x32xf32, #tpu.memory_space<vmem>>, vector<1x32xf32>
    %21 = vector.shape_cast %20 : vector<1x32xf32> to vector<1x32xf32>
    %22 = vector.broadcast %21 : vector<1x32xf32> to vector<8x32xf32>
    %c0_16 = arith.constant 0 : index
    %c0_17 = arith.constant 0 : index
    %23 = vector.load %arg7[%c0_16, %c0_17] : memref<1x32xf32, #tpu.memory_space<vmem>>, vector<1x32xf32>
    %24 = vector.shape_cast %23 : vector<1x32xf32> to vector<1x32xf32>
    %25 = vector.broadcast %24 : vector<1x32xf32> to vector<8x32xf32>
    %cst_18 = arith.constant 0.000000e+00 : f32
    %26 = vector.broadcast %cst_18 : f32 to vector<8x32xf32>
    %c0_i32 = arith.constant 0 : i32
    %27 = arith.index_cast %c0_i32 : i32 to index
    %c0_19 = arith.constant 0 : index
    %c0_20 = arith.constant 0 : index
    %28 = vector.load %arg10[%27, %c0_19, %c0_20] : memref<8x8x128xbf16, #tpu.memory_space<vmem>>, vector<1x8x128xbf16>
    %29 = vector.shape_cast %28 : vector<1x8x128xbf16> to vector<8x128xbf16>
    %30 = arith.extf %29 : vector<8x128xbf16> to vector<8x128xf32>
    %31 = arith.truncf %22 : vector<8x32xf32> to vector<8x32xbf16>
    %cst_21 = arith.constant dense<0.000000e+00> : vector<8x128xf32>
    %32 = tpu.matmul %31, %17, %cst_21 {dimension_numbers = #tpu.dot_dimension_numbers<[1], [0], [0], [1], [0, 0, 1, 1], [], []>} : vector<8x32xbf16>, vector<32x128xbf16>, vector<8x128xf32> -> vector<8x128xf32>
    %33 = arith.addf %30, %32 : vector<8x128xf32>
    %34 = vector.extract_strided_slice %33 {offsets = [0, 0], sizes = [8, 32], strides = [1, 1]} : vector<8x128xf32> to vector<8x32xf32>
    %35 = arith.negf %34 : vector<8x32xf32>
    %36 = math.exp %35 : vector<8x32xf32>
    %cst_22 = arith.constant 1.000000e+00 : f32
    %37 = vector.broadcast %cst_22 : f32 to vector<8x32xf32>
    %38 = arith.addf %37, %36 : vector<8x32xf32>
    %39 = arith.divf %37, %38 : vector<8x32xf32>
    %40 = vector.extract_strided_slice %33 {offsets = [0, 32], sizes = [8, 32], strides = [1, 1]} : vector<8x128xf32> to vector<8x32xf32>
    %41 = arith.negf %40 : vector<8x32xf32>
    %42 = math.exp %41 : vector<8x32xf32>
    %cst_23 = arith.constant 1.000000e+00 : f32
    %43 = vector.broadcast %cst_23 : f32 to vector<8x32xf32>
    %44 = arith.addf %43, %42 : vector<8x32xf32>
    %45 = arith.divf %43, %44 : vector<8x32xf32>
    %46 = vector.extract_strided_slice %33 {offsets = [0, 64], sizes = [8, 32], strides = [1, 1]} : vector<8x128xf32> to vector<8x32xf32>
    %47 = math.tanh %46 : vector<8x32xf32>
    %48 = vector.extract_strided_slice %33 {offsets = [0, 96], sizes = [8, 32], strides = [1, 1]} : vector<8x128xf32> to vector<8x32xf32>
    %49 = arith.negf %48 : vector<8x32xf32>
    %50 = math.exp %49 : vector<8x32xf32>
    %cst_24 = arith.constant 1.000000e+00 : f32
    %51 = vector.broadcast %cst_24 : f32 to vector<8x32xf32>
    %52 = arith.addf %51, %50 : vector<8x32xf32>
    %53 = arith.divf %51, %52 : vector<8x32xf32>
    %54 = arith.mulf %45, %25 : vector<8x32xf32>
    %55 = arith.mulf %39, %47 : vector<8x32xf32>
    %56 = arith.addf %54, %55 : vector<8x32xf32>
    %57 = math.tanh %56 : vector<8x32xf32>
    %58 = arith.mulf %53, %57 : vector<8x32xf32>
    %59 = vector.broadcast %19 : vector<1x32xf32> to vector<8x32xf32>
    %60 = arith.mulf %58, %59 : vector<8x32xf32>
    %cst_25 = arith.constant dense<0.000000e+00> : vector<8xf32>
    %61 = vector.multi_reduction <add>, %60, %cst_25 [1] : vector<8x32xf32> to vector<8xf32>
    %62 = vector.shape_cast %61 : vector<8xf32> to vector<8x1xf32>
    %63 = arith.negf %62 : vector<8x1xf32>
    %64 = math.exp %63 : vector<8x1xf32>
    %cst_26 = arith.constant 1.000000e+00 : f32
    %65 = vector.broadcast %cst_26 : f32 to vector<8x1xf32>
    %66 = arith.addf %65, %64 : vector<8x1xf32>
    %67 = arith.divf %65, %66 : vector<8x1xf32>
    %68 = vector.broadcast %c0_i32 : i32 to vector<8x1xi32>
    %69 = arith.cmpi slt, %68, %18 : vector<8x1xi32>
    %70 = vector.broadcast %67 : vector<8x1xf32> to vector<8x32xf32>
    %71 = arith.mulf %70, %58 : vector<8x32xf32>
    %cst_27 = arith.constant 0.000000e+00 : f32
    %72 = vector.shape_cast %69 : vector<8x1xi1> to vector<8x1xi1>
    %73 = vector.broadcast %72 : vector<8x1xi1> to vector<8x32xi1>
    %74 = vector.broadcast %cst_27 : f32 to vector<8x32xf32>
    %75 = arith.select %73, %71, %74 : vector<8x32xi1>, vector<8x32xf32>
    %76 = arith.addf %26, %75 : vector<8x32xf32>
    %c1_i32 = arith.constant 1 : i32
    %77 = arith.index_cast %c1_i32 : i32 to index
    %c0_28 = arith.constant 0 : index
    %c0_29 = arith.constant 0 : index
    %78 = vector.load %arg10[%77, %c0_28, %c0_29] : memref<8x8x128xbf16, #tpu.memory_space<vmem>>, vector<1x8x128xbf16>
    %79 = vector.shape_cast %78 : vector<1x8x128xbf16> to vector<8x128xbf16>
    %80 = arith.extf %79 : vector<8x128xbf16> to vector<8x128xf32>
    %81 = arith.truncf %58 : vector<8x32xf32> to vector<8x32xbf16>
    %cst_30 = arith.constant dense<0.000000e+00> : vector<8x128xf32>
    %82 = tpu.matmul %81, %17, %cst_30 {dimension_numbers = #tpu.dot_dimension_numbers<[1], [0], [0], [1], [0, 0, 1, 1], [], []>} : vector<8x32xbf16>, vector<32x128xbf16>, vector<8x128xf32> -> vector<8x128xf32>
    %83 = arith.addf %80, %82 : vector<8x128xf32>
    %84 = vector.extract_strided_slice %83 {offsets = [0, 0], sizes = [8, 32], strides = [1, 1]} : vector<8x128xf32> to vector<8x32xf32>
    %85 = arith.negf %84 : vector<8x32xf32>
    %86 = math.exp %85 : vector<8x32xf32>
    %cst_31 = arith.constant 1.000000e+00 : f32
    %87 = vector.broadcast %cst_31 : f32 to vector<8x32xf32>
    %88 = arith.addf %87, %86 : vector<8x32xf32>
    %89 = arith.divf %87, %88 : vector<8x32xf32>
    %90 = vector.extract_strided_slice %83 {offsets = [0, 32], sizes = [8, 32], strides = [1, 1]} : vector<8x128xf32> to vector<8x32xf32>
    %91 = arith.negf %90 : vector<8x32xf32>
    %92 = math.exp %91 : vector<8x32xf32>
    %cst_32 = arith.constant 1.000000e+00 : f32
    %93 = vector.broadcast %cst_32 : f32 to vector<8x32xf32>
    %94 = arith.addf %93, %92 : vector<8x32xf32>
    %95 = arith.divf %93, %94 : vector<8x32xf32>
    %96 = vector.extract_strided_slice %83 {offsets = [0, 64], sizes = [8, 32], strides = [1, 1]} : vector<8x128xf32> to vector<8x32xf32>
    %97 = math.tanh %96 : vector<8x32xf32>
    %98 = vector.extract_strided_slice %83 {offsets = [0, 96], sizes = [8, 32], strides = [1, 1]} : vector<8x128xf32> to vector<8x32xf32>
    %99 = arith.negf %98 : vector<8x32xf32>
    %100 = math.exp %99 : vector<8x32xf32>
    %cst_33 = arith.constant 1.000000e+00 : f32
    %101 = vector.broadcast %cst_33 : f32 to vector<8x32xf32>
    %102 = arith.addf %101, %100 : vector<8x32xf32>
    %103 = arith.divf %101, %102 : vector<8x32xf32>
    %104 = arith.mulf %95, %56 : vector<8x32xf32>
    %105 = arith.mulf %89, %97 : vector<8x32xf32>
    %106 = arith.addf %104, %105 : vector<8x32xf32>
    %107 = math.tanh %106 : vector<8x32xf32>
    %108 = arith.mulf %103, %107 : vector<8x32xf32>
    %109 = vector.broadcast %19 : vector<1x32xf32> to vector<8x32xf32>
    %110 = arith.mulf %108, %109 : vector<8x32xf32>
    %cst_34 = arith.constant dense<0.000000e+00> : vector<8xf32>
    %111 = vector.multi_reduction <add>, %110, %cst_34 [1] : vector<8x32xf32> to vector<8xf32>
    %112 = vector.shape_cast %111 : vector<8xf32> to vector<8x1xf32>
    %113 = arith.negf %112 : vector<8x1xf32>
    %114 = math.exp %113 : vector<8x1xf32>
    %cst_35 = arith.constant 1.000000e+00 : f32
    %115 = vector.broadcast %cst_35 : f32 to vector<8x1xf32>
    %116 = arith.addf %115, %114 : vector<8x1xf32>
    %117 = arith.divf %115, %116 : vector<8x1xf32>
    %118 = vector.broadcast %c1_i32 : i32 to vector<8x1xi32>
    %119 = arith.cmpi slt, %118, %18 : vector<8x1xi32>
    %120 = vector.broadcast %117 : vector<8x1xf32> to vector<8x32xf32>
    %121 = arith.mulf %120, %108 : vector<8x32xf32>
    %cst_36 = arith.constant 0.000000e+00 : f32
    %122 = vector.shape_cast %119 : vector<8x1xi1> to vector<8x1xi1>
    %123 = vector.broadcast %122 : vector<8x1xi1> to vector<8x32xi1>
    %124 = vector.broadcast %cst_36 : f32 to vector<8x32xf32>
    %125 = arith.select %123, %121, %124 : vector<8x32xi1>, vector<8x32xf32>
    %126 = arith.addf %76, %125 : vector<8x32xf32>
    %c2_i32 = arith.constant 2 : i32
    %127 = arith.index_cast %c2_i32 : i32 to index
    %c0_37 = arith.constant 0 : index
    %c0_38 = arith.constant 0 : index
    %128 = vector.load %arg10[%127, %c0_37, %c0_38] : memref<8x8x128xbf16, #tpu.memory_space<vmem>>, vector<1x8x128xbf16>
    %129 = vector.shape_cast %128 : vector<1x8x128xbf16> to vector<8x128xbf16>
    %130 = arith.extf %129 : vector<8x128xbf16> to vector<8x128xf32>
    %131 = arith.truncf %108 : vector<8x32xf32> to vector<8x32xbf16>
    %cst_39 = arith.constant dense<0.000000e+00> : vector<8x128xf32>
    %132 = tpu.matmul %131, %17, %cst_39 {dimension_numbers = #tpu.dot_dimension_numbers<[1], [0], [0], [1], [0, 0, 1, 1], [], []>} : vector<8x32xbf16>, vector<32x128xbf16>, vector<8x128xf32> -> vector<8x128xf32>
    %133 = arith.addf %130, %132 : vector<8x128xf32>
    %134 = vector.extract_strided_slice %133 {offsets = [0, 0], sizes = [8, 32], strides = [1, 1]} : vector<8x128xf32> to vector<8x32xf32>
    %135 = arith.negf %134 : vector<8x32xf32>
    %136 = math.exp %135 : vector<8x32xf32>
    %cst_40 = arith.constant 1.000000e+00 : f32
    %137 = vector.broadcast %cst_40 : f32 to vector<8x32xf32>
    %138 = arith.addf %137, %136 : vector<8x32xf32>
    %139 = arith.divf %137, %138 : vector<8x32xf32>
    %140 = vector.extract_strided_slice %133 {offsets = [0, 32], sizes = [8, 32], strides = [1, 1]} : vector<8x128xf32> to vector<8x32xf32>
    %141 = arith.negf %140 : vector<8x32xf32>
    %142 = math.exp %141 : vector<8x32xf32>
    %cst_41 = arith.constant 1.000000e+00 : f32
    %143 = vector.broadcast %cst_41 : f32 to vector<8x32xf32>
    %144 = arith.addf %143, %142 : vector<8x32xf32>
    %145 = arith.divf %143, %144 : vector<8x32xf32>
    %146 = vector.extract_strided_slice %133 {offsets = [0, 64], sizes = [8, 32], strides = [1, 1]} : vector<8x128xf32> to vector<8x32xf32>
    %147 = math.tanh %146 : vector<8x32xf32>
    %148 = vector.extract_strided_slice %133 {offsets = [0, 96], sizes = [8, 32], strides = [1, 1]} : vector<8x128xf32> to vector<8x32xf32>
    %149 = arith.negf %148 : vector<8x32xf32>
    %150 = math.exp %149 : vector<8x32xf32>
    %cst_42 = arith.constant 1.000000e+00 : f32
    %151 = vector.broadcast %cst_42 : f32 to vector<8x32xf32>
    %152 = arith.addf %151, %150 : vector<8x32xf32>
    %153 = arith.divf %151, %152 : vector<8x32xf32>
    %154 = arith.mulf %145, %106 : vector<8x32xf32>
    %155 = arith.mulf %139, %147 : vector<8x32xf32>
    %156 = arith.addf %154, %155 : vector<8x32xf32>
    %157 = math.tanh %156 : vector<8x32xf32>
    %158 = arith.mulf %153, %157 : vector<8x32xf32>
    %159 = vector.broadcast %19 : vector<1x32xf32> to vector<8x32xf32>
    %160 = arith.mulf %158, %159 : vector<8x32xf32>
    %cst_43 = arith.constant dense<0.000000e+00> : vector<8xf32>
    %161 = vector.multi_reduction <add>, %160, %cst_43 [1] : vector<8x32xf32> to vector<8xf32>
    %162 = vector.shape_cast %161 : vector<8xf32> to vector<8x1xf32>
    %163 = arith.negf %162 : vector<8x1xf32>
    %164 = math.exp %163 : vector<8x1xf32>
    %cst_44 = arith.constant 1.000000e+00 : f32
    %165 = vector.broadcast %cst_44 : f32 to vector<8x1xf32>
    %166 = arith.addf %165, %164 : vector<8x1xf32>
    %167 = arith.divf %165, %166 : vector<8x1xf32>
    %168 = vector.broadcast %c2_i32 : i32 to vector<8x1xi32>
    %169 = arith.cmpi slt, %168, %18 : vector<8x1xi32>
    %170 = vector.broadcast %167 : vector<8x1xf32> to vector<8x32xf32>
    %171 = arith.mulf %170, %158 : vector<8x32xf32>
    %cst_45 = arith.constant 0.000000e+00 : f32
    %172 = vector.shape_cast %169 : vector<8x1xi1> to vector<8x1xi1>
    %173 = vector.broadcast %172 : vector<8x1xi1> to vector<8x32xi1>
    %174 = vector.broadcast %cst_45 : f32 to vector<8x32xf32>
    %175 = arith.select %173, %171, %174 : vector<8x32xi1>, vector<8x32xf32>
    %176 = arith.addf %126, %175 : vector<8x32xf32>
    %c3_i32 = arith.constant 3 : i32
    %177 = arith.index_cast %c3_i32 : i32 to index
    %c0_46 = arith.constant 0 : index
    %c0_47 = arith.constant 0 : index
    %178 = vector.load %arg10[%177, %c0_46, %c0_47] : memref<8x8x128xbf16, #tpu.memory_space<vmem>>, vector<1x8x128xbf16>
    %179 = vector.shape_cast %178 : vector<1x8x128xbf16> to vector<8x128xbf16>
    %180 = arith.extf %179 : vector<8x128xbf16> to vector<8x128xf32>
    %181 = arith.truncf %158 : vector<8x32xf32> to vector<8x32xbf16>
    %cst_48 = arith.constant dense<0.000000e+00> : vector<8x128xf32>
    %182 = tpu.matmul %181, %17, %cst_48 {dimension_numbers = #tpu.dot_dimension_numbers<[1], [0], [0], [1], [0, 0, 1, 1], [], []>} : vector<8x32xbf16>, vector<32x128xbf16>, vector<8x128xf32> -> vector<8x128xf32>
    %183 = arith.addf %180, %182 : vector<8x128xf32>
    %184 = vector.extract_strided_slice %183 {offsets = [0, 0], sizes = [8, 32], strides = [1, 1]} : vector<8x128xf32> to vector<8x32xf32>
    %185 = arith.negf %184 : vector<8x32xf32>
    %186 = math.exp %185 : vector<8x32xf32>
    %cst_49 = arith.constant 1.000000e+00 : f32
    %187 = vector.broadcast %cst_49 : f32 to vector<8x32xf32>
    %188 = arith.addf %187, %186 : vector<8x32xf32>
    %189 = arith.divf %187, %188 : vector<8x32xf32>
    %190 = vector.extract_strided_slice %183 {offsets = [0, 32], sizes = [8, 32], strides = [1, 1]} : vector<8x128xf32> to vector<8x32xf32>
    %191 = arith.negf %190 : vector<8x32xf32>
    %192 = math.exp %191 : vector<8x32xf32>
    %cst_50 = arith.constant 1.000000e+00 : f32
    %193 = vector.broadcast %cst_50 : f32 to vector<8x32xf32>
    %194 = arith.addf %193, %192 : vector<8x32xf32>
    %195 = arith.divf %193, %194 : vector<8x32xf32>
    %196 = vector.extract_strided_slice %183 {offsets = [0, 64], sizes = [8, 32], strides = [1, 1]} : vector<8x128xf32> to vector<8x32xf32>
    %197 = math.tanh %196 : vector<8x32xf32>
    %198 = vector.extract_strided_slice %183 {offsets = [0, 96], sizes = [8, 32], strides = [1, 1]} : vector<8x128xf32> to vector<8x32xf32>
    %199 = arith.negf %198 : vector<8x32xf32>
    %200 = math.exp %199 : vector<8x32xf32>
    %cst_51 = arith.constant 1.000000e+00 : f32
    %201 = vector.broadcast %cst_51 : f32 to vector<8x32xf32>
    %202 = arith.addf %201, %200 : vector<8x32xf32>
    %203 = arith.divf %201, %202 : vector<8x32xf32>
    %204 = arith.mulf %195, %156 : vector<8x32xf32>
    %205 = arith.mulf %189, %197 : vector<8x32xf32>
    %206 = arith.addf %204, %205 : vector<8x32xf32>
    %207 = math.tanh %206 : vector<8x32xf32>
    %208 = arith.mulf %203, %207 : vector<8x32xf32>
    %209 = vector.broadcast %19 : vector<1x32xf32> to vector<8x32xf32>
    %210 = arith.mulf %208, %209 : vector<8x32xf32>
    %cst_52 = arith.constant dense<0.000000e+00> : vector<8xf32>
    %211 = vector.multi_reduction <add>, %210, %cst_52 [1] : vector<8x32xf32> to vector<8xf32>
    %212 = vector.shape_cast %211 : vector<8xf32> to vector<8x1xf32>
    %213 = arith.negf %212 : vector<8x1xf32>
    %214 = math.exp %213 : vector<8x1xf32>
    %cst_53 = arith.constant 1.000000e+00 : f32
    %215 = vector.broadcast %cst_53 : f32 to vector<8x1xf32>
    %216 = arith.addf %215, %214 : vector<8x1xf32>
    %217 = arith.divf %215, %216 : vector<8x1xf32>
    %218 = vector.broadcast %c3_i32 : i32 to vector<8x1xi32>
    %219 = arith.cmpi slt, %218, %18 : vector<8x1xi32>
    %220 = vector.broadcast %217 : vector<8x1xf32> to vector<8x32xf32>
    %221 = arith.mulf %220, %208 : vector<8x32xf32>
    %cst_54 = arith.constant 0.000000e+00 : f32
    %222 = vector.shape_cast %219 : vector<8x1xi1> to vector<8x1xi1>
    %223 = vector.broadcast %222 : vector<8x1xi1> to vector<8x32xi1>
    %224 = vector.broadcast %cst_54 : f32 to vector<8x32xf32>
    %225 = arith.select %223, %221, %224 : vector<8x32xi1>, vector<8x32xf32>
    %226 = arith.addf %176, %225 : vector<8x32xf32>
    %c4_i32 = arith.constant 4 : i32
    %227 = arith.index_cast %c4_i32 : i32 to index
    %c0_55 = arith.constant 0 : index
    %c0_56 = arith.constant 0 : index
    %228 = vector.load %arg10[%227, %c0_55, %c0_56] : memref<8x8x128xbf16, #tpu.memory_space<vmem>>, vector<1x8x128xbf16>
    %229 = vector.shape_cast %228 : vector<1x8x128xbf16> to vector<8x128xbf16>
    %230 = arith.extf %229 : vector<8x128xbf16> to vector<8x128xf32>
    %231 = arith.truncf %208 : vector<8x32xf32> to vector<8x32xbf16>
    %cst_57 = arith.constant dense<0.000000e+00> : vector<8x128xf32>
    %232 = tpu.matmul %231, %17, %cst_57 {dimension_numbers = #tpu.dot_dimension_numbers<[1], [0], [0], [1], [0, 0, 1, 1], [], []>} : vector<8x32xbf16>, vector<32x128xbf16>, vector<8x128xf32> -> vector<8x128xf32>
    %233 = arith.addf %230, %232 : vector<8x128xf32>
    %234 = vector.extract_strided_slice %233 {offsets = [0, 0], sizes = [8, 32], strides = [1, 1]} : vector<8x128xf32> to vector<8x32xf32>
    %235 = arith.negf %234 : vector<8x32xf32>
    %236 = math.exp %235 : vector<8x32xf32>
    %cst_58 = arith.constant 1.000000e+00 : f32
    %237 = vector.broadcast %cst_58 : f32 to vector<8x32xf32>
    %238 = arith.addf %237, %236 : vector<8x32xf32>
    %239 = arith.divf %237, %238 : vector<8x32xf32>
    %240 = vector.extract_strided_slice %233 {offsets = [0, 32], sizes = [8, 32], strides = [1, 1]} : vector<8x128xf32> to vector<8x32xf32>
    %241 = arith.negf %240 : vector<8x32xf32>
    %242 = math.exp %241 : vector<8x32xf32>
    %cst_59 = arith.constant 1.000000e+00 : f32
    %243 = vector.broadcast %cst_59 : f32 to vector<8x32xf32>
    %244 = arith.addf %243, %242 : vector<8x32xf32>
    %245 = arith.divf %243, %244 : vector<8x32xf32>
    %246 = vector.extract_strided_slice %233 {offsets = [0, 64], sizes = [8, 32], strides = [1, 1]} : vector<8x128xf32> to vector<8x32xf32>
    %247 = math.tanh %246 : vector<8x32xf32>
    %248 = vector.extract_strided_slice %233 {offsets = [0, 96], sizes = [8, 32], strides = [1, 1]} : vector<8x128xf32> to vector<8x32xf32>
    %249 = arith.negf %248 : vector<8x32xf32>
    %250 = math.exp %249 : vector<8x32xf32>
    %cst_60 = arith.constant 1.000000e+00 : f32
    %251 = vector.broadcast %cst_60 : f32 to vector<8x32xf32>
    %252 = arith.addf %251, %250 : vector<8x32xf32>
    %253 = arith.divf %251, %252 : vector<8x32xf32>
    %254 = arith.mulf %245, %206 : vector<8x32xf32>
    %255 = arith.mulf %239, %247 : vector<8x32xf32>
    %256 = arith.addf %254, %255 : vector<8x32xf32>
    %257 = math.tanh %256 : vector<8x32xf32>
    %258 = arith.mulf %253, %257 : vector<8x32xf32>
    %259 = vector.broadcast %19 : vector<1x32xf32> to vector<8x32xf32>
    %260 = arith.mulf %258, %259 : vector<8x32xf32>
    %cst_61 = arith.constant dense<0.000000e+00> : vector<8xf32>
    %261 = vector.multi_reduction <add>, %260, %cst_61 [1] : vector<8x32xf32> to vector<8xf32>
    %262 = vector.shape_cast %261 : vector<8xf32> to vector<8x1xf32>
    %263 = arith.negf %262 : vector<8x1xf32>
    %264 = math.exp %263 : vector<8x1xf32>
    %cst_62 = arith.constant 1.000000e+00 : f32
    %265 = vector.broadcast %cst_62 : f32 to vector<8x1xf32>
    %266 = arith.addf %265, %264 : vector<8x1xf32>
    %267 = arith.divf %265, %266 : vector<8x1xf32>
    %268 = vector.broadcast %c4_i32 : i32 to vector<8x1xi32>
    %269 = arith.cmpi slt, %268, %18 : vector<8x1xi32>
    %270 = vector.broadcast %267 : vector<8x1xf32> to vector<8x32xf32>
    %271 = arith.mulf %270, %258 : vector<8x32xf32>
    %cst_63 = arith.constant 0.000000e+00 : f32
    %272 = vector.shape_cast %269 : vector<8x1xi1> to vector<8x1xi1>
    %273 = vector.broadcast %272 : vector<8x1xi1> to vector<8x32xi1>
    %274 = vector.broadcast %cst_63 : f32 to vector<8x32xf32>
    %275 = arith.select %273, %271, %274 : vector<8x32xi1>, vector<8x32xf32>
    %276 = arith.addf %226, %275 : vector<8x32xf32>
    %c5_i32 = arith.constant 5 : i32
    %277 = arith.index_cast %c5_i32 : i32 to index
    %c0_64 = arith.constant 0 : index
    %c0_65 = arith.constant 0 : index
    %278 = vector.load %arg10[%277, %c0_64, %c0_65] : memref<8x8x128xbf16, #tpu.memory_space<vmem>>, vector<1x8x128xbf16>
    %279 = vector.shape_cast %278 : vector<1x8x128xbf16> to vector<8x128xbf16>
    %280 = arith.extf %279 : vector<8x128xbf16> to vector<8x128xf32>
    %281 = arith.truncf %258 : vector<8x32xf32> to vector<8x32xbf16>
    %cst_66 = arith.constant dense<0.000000e+00> : vector<8x128xf32>
    %282 = tpu.matmul %281, %17, %cst_66 {dimension_numbers = #tpu.dot_dimension_numbers<[1], [0], [0], [1], [0, 0, 1, 1], [], []>} : vector<8x32xbf16>, vector<32x128xbf16>, vector<8x128xf32> -> vector<8x128xf32>
    %283 = arith.addf %280, %282 : vector<8x128xf32>
    %284 = vector.extract_strided_slice %283 {offsets = [0, 0], sizes = [8, 32], strides = [1, 1]} : vector<8x128xf32> to vector<8x32xf32>
    %285 = arith.negf %284 : vector<8x32xf32>
    %286 = math.exp %285 : vector<8x32xf32>
    %cst_67 = arith.constant 1.000000e+00 : f32
    %287 = vector.broadcast %cst_67 : f32 to vector<8x32xf32>
    %288 = arith.addf %287, %286 : vector<8x32xf32>
    %289 = arith.divf %287, %288 : vector<8x32xf32>
    %290 = vector.extract_strided_slice %283 {offsets = [0, 32], sizes = [8, 32], strides = [1, 1]} : vector<8x128xf32> to vector<8x32xf32>
    %291 = arith.negf %290 : vector<8x32xf32>
    %292 = math.exp %291 : vector<8x32xf32>
    %cst_68 = arith.constant 1.000000e+00 : f32
    %293 = vector.broadcast %cst_68 : f32 to vector<8x32xf32>
    %294 = arith.addf %293, %292 : vector<8x32xf32>
    %295 = arith.divf %293, %294 : vector<8x32xf32>
    %296 = vector.extract_strided_slice %283 {offsets = [0, 64], sizes = [8, 32], strides = [1, 1]} : vector<8x128xf32> to vector<8x32xf32>
    %297 = math.tanh %296 : vector<8x32xf32>
    %298 = vector.extract_strided_slice %283 {offsets = [0, 96], sizes = [8, 32], strides = [1, 1]} : vector<8x128xf32> to vector<8x32xf32>
    %299 = arith.negf %298 : vector<8x32xf32>
    %300 = math.exp %299 : vector<8x32xf32>
    %cst_69 = arith.constant 1.000000e+00 : f32
    %301 = vector.broadcast %cst_69 : f32 to vector<8x32xf32>
    %302 = arith.addf %301, %300 : vector<8x32xf32>
    %303 = arith.divf %301, %302 : vector<8x32xf32>
    %304 = arith.mulf %295, %256 : vector<8x32xf32>
    %305 = arith.mulf %289, %297 : vector<8x32xf32>
    %306 = arith.addf %304, %305 : vector<8x32xf32>
    %307 = math.tanh %306 : vector<8x32xf32>
    %308 = arith.mulf %303, %307 : vector<8x32xf32>
    %309 = vector.broadcast %19 : vector<1x32xf32> to vector<8x32xf32>
    %310 = arith.mulf %308, %309 : vector<8x32xf32>
    %cst_70 = arith.constant dense<0.000000e+00> : vector<8xf32>
    %311 = vector.multi_reduction <add>, %310, %cst_70 [1] : vector<8x32xf32> to vector<8xf32>
    %312 = vector.shape_cast %311 : vector<8xf32> to vector<8x1xf32>
    %313 = arith.negf %312 : vector<8x1xf32>
    %314 = math.exp %313 : vector<8x1xf32>
    %cst_71 = arith.constant 1.000000e+00 : f32
    %315 = vector.broadcast %cst_71 : f32 to vector<8x1xf32>
    %316 = arith.addf %315, %314 : vector<8x1xf32>
    %317 = arith.divf %315, %316 : vector<8x1xf32>
    %318 = vector.broadcast %c5_i32 : i32 to vector<8x1xi32>
    %319 = arith.cmpi slt, %318, %18 : vector<8x1xi32>
    %320 = vector.broadcast %317 : vector<8x1xf32> to vector<8x32xf32>
    %321 = arith.mulf %320, %308 : vector<8x32xf32>
    %cst_72 = arith.constant 0.000000e+00 : f32
    %322 = vector.shape_cast %319 : vector<8x1xi1> to vector<8x1xi1>
    %323 = vector.broadcast %322 : vector<8x1xi1> to vector<8x32xi1>
    %324 = vector.broadcast %cst_72 : f32 to vector<8x32xf32>
    %325 = arith.select %323, %321, %324 : vector<8x32xi1>, vector<8x32xf32>
    %326 = arith.addf %276, %325 : vector<8x32xf32>
    %c6_i32 = arith.constant 6 : i32
    %327 = arith.index_cast %c6_i32 : i32 to index
    %c0_73 = arith.constant 0 : index
    %c0_74 = arith.constant 0 : index
    %328 = vector.load %arg10[%327, %c0_73, %c0_74] : memref<8x8x128xbf16, #tpu.memory_space<vmem>>, vector<1x8x128xbf16>
    %329 = vector.shape_cast %328 : vector<1x8x128xbf16> to vector<8x128xbf16>
    %330 = arith.extf %329 : vector<8x128xbf16> to vector<8x128xf32>
    %331 = arith.truncf %308 : vector<8x32xf32> to vector<8x32xbf16>
    %cst_75 = arith.constant dense<0.000000e+00> : vector<8x128xf32>
    %332 = tpu.matmul %331, %17, %cst_75 {dimension_numbers = #tpu.dot_dimension_numbers<[1], [0], [0], [1], [0, 0, 1, 1], [], []>} : vector<8x32xbf16>, vector<32x128xbf16>, vector<8x128xf32> -> vector<8x128xf32>
    %333 = arith.addf %330, %332 : vector<8x128xf32>
    %334 = vector.extract_strided_slice %333 {offsets = [0, 0], sizes = [8, 32], strides = [1, 1]} : vector<8x128xf32> to vector<8x32xf32>
    %335 = arith.negf %334 : vector<8x32xf32>
    %336 = math.exp %335 : vector<8x32xf32>
    %cst_76 = arith.constant 1.000000e+00 : f32
    %337 = vector.broadcast %cst_76 : f32 to vector<8x32xf32>
    %338 = arith.addf %337, %336 : vector<8x32xf32>
    %339 = arith.divf %337, %338 : vector<8x32xf32>
    %340 = vector.extract_strided_slice %333 {offsets = [0, 32], sizes = [8, 32], strides = [1, 1]} : vector<8x128xf32> to vector<8x32xf32>
    %341 = arith.negf %340 : vector<8x32xf32>
    %342 = math.exp %341 : vector<8x32xf32>
    %cst_77 = arith.constant 1.000000e+00 : f32
    %343 = vector.broadcast %cst_77 : f32 to vector<8x32xf32>
    %344 = arith.addf %343, %342 : vector<8x32xf32>
    %345 = arith.divf %343, %344 : vector<8x32xf32>
    %346 = vector.extract_strided_slice %333 {offsets = [0, 64], sizes = [8, 32], strides = [1, 1]} : vector<8x128xf32> to vector<8x32xf32>
    %347 = math.tanh %346 : vector<8x32xf32>
    %348 = vector.extract_strided_slice %333 {offsets = [0, 96], sizes = [8, 32], strides = [1, 1]} : vector<8x128xf32> to vector<8x32xf32>
    %349 = arith.negf %348 : vector<8x32xf32>
    %350 = math.exp %349 : vector<8x32xf32>
    %cst_78 = arith.constant 1.000000e+00 : f32
    %351 = vector.broadcast %cst_78 : f32 to vector<8x32xf32>
    %352 = arith.addf %351, %350 : vector<8x32xf32>
    %353 = arith.divf %351, %352 : vector<8x32xf32>
    %354 = arith.mulf %345, %306 : vector<8x32xf32>
    %355 = arith.mulf %339, %347 : vector<8x32xf32>
    %356 = arith.addf %354, %355 : vector<8x32xf32>
    %357 = math.tanh %356 : vector<8x32xf32>
    %358 = arith.mulf %353, %357 : vector<8x32xf32>
    %359 = vector.broadcast %19 : vector<1x32xf32> to vector<8x32xf32>
    %360 = arith.mulf %358, %359 : vector<8x32xf32>
    %cst_79 = arith.constant dense<0.000000e+00> : vector<8xf32>
    %361 = vector.multi_reduction <add>, %360, %cst_79 [1] : vector<8x32xf32> to vector<8xf32>
    %362 = vector.shape_cast %361 : vector<8xf32> to vector<8x1xf32>
    %363 = arith.negf %362 : vector<8x1xf32>
    %364 = math.exp %363 : vector<8x1xf32>
    %cst_80 = arith.constant 1.000000e+00 : f32
    %365 = vector.broadcast %cst_80 : f32 to vector<8x1xf32>
    %366 = arith.addf %365, %364 : vector<8x1xf32>
    %367 = arith.divf %365, %366 : vector<8x1xf32>
    %368 = vector.broadcast %c6_i32 : i32 to vector<8x1xi32>
    %369 = arith.cmpi slt, %368, %18 : vector<8x1xi32>
    %370 = vector.broadcast %367 : vector<8x1xf32> to vector<8x32xf32>
    %371 = arith.mulf %370, %358 : vector<8x32xf32>
    %cst_81 = arith.constant 0.000000e+00 : f32
    %372 = vector.shape_cast %369 : vector<8x1xi1> to vector<8x1xi1>
    %373 = vector.broadcast %372 : vector<8x1xi1> to vector<8x32xi1>
    %374 = vector.broadcast %cst_81 : f32 to vector<8x32xf32>
    %375 = arith.select %373, %371, %374 : vector<8x32xi1>, vector<8x32xf32>
    %376 = arith.addf %326, %375 : vector<8x32xf32>
    %c7_i32 = arith.constant 7 : i32
    %377 = arith.index_cast %c7_i32 : i32 to index
    %c0_82 = arith.constant 0 : index
    %c0_83 = arith.constant 0 : index
    %378 = vector.load %arg10[%377, %c0_82, %c0_83] : memref<8x8x128xbf16, #tpu.memory_space<vmem>>, vector<1x8x128xbf16>
    %379 = vector.shape_cast %378 : vector<1x8x128xbf16> to vector<8x128xbf16>
    %380 = arith.extf %379 : vector<8x128xbf16> to vector<8x128xf32>
    %381 = arith.truncf %358 : vector<8x32xf32> to vector<8x32xbf16>
    %cst_84 = arith.constant dense<0.000000e+00> : vector<8x128xf32>
    %382 = tpu.matmul %381, %17, %cst_84 {dimension_numbers = #tpu.dot_dimension_numbers<[1], [0], [0], [1], [0, 0, 1, 1], [], []>} : vector<8x32xbf16>, vector<32x128xbf16>, vector<8x128xf32> -> vector<8x128xf32>
    %383 = arith.addf %380, %382 : vector<8x128xf32>
    %384 = vector.extract_strided_slice %383 {offsets = [0, 0], sizes = [8, 32], strides = [1, 1]} : vector<8x128xf32> to vector<8x32xf32>
    %385 = arith.negf %384 : vector<8x32xf32>
    %386 = math.exp %385 : vector<8x32xf32>
    %cst_85 = arith.constant 1.000000e+00 : f32
    %387 = vector.broadcast %cst_85 : f32 to vector<8x32xf32>
    %388 = arith.addf %387, %386 : vector<8x32xf32>
    %389 = arith.divf %387, %388 : vector<8x32xf32>
    %390 = vector.extract_strided_slice %383 {offsets = [0, 32], sizes = [8, 32], strides = [1, 1]} : vector<8x128xf32> to vector<8x32xf32>
    %391 = arith.negf %390 : vector<8x32xf32>
    %392 = math.exp %391 : vector<8x32xf32>
    %cst_86 = arith.constant 1.000000e+00 : f32
    %393 = vector.broadcast %cst_86 : f32 to vector<8x32xf32>
    %394 = arith.addf %393, %392 : vector<8x32xf32>
    %395 = arith.divf %393, %394 : vector<8x32xf32>
    %396 = vector.extract_strided_slice %383 {offsets = [0, 64], sizes = [8, 32], strides = [1, 1]} : vector<8x128xf32> to vector<8x32xf32>
    %397 = math.tanh %396 : vector<8x32xf32>
    %398 = vector.extract_strided_slice %383 {offsets = [0, 96], sizes = [8, 32], strides = [1, 1]} : vector<8x128xf32> to vector<8x32xf32>
    %399 = arith.negf %398 : vector<8x32xf32>
    %400 = math.exp %399 : vector<8x32xf32>
    %cst_87 = arith.constant 1.000000e+00 : f32
    %401 = vector.broadcast %cst_87 : f32 to vector<8x32xf32>
    %402 = arith.addf %401, %400 : vector<8x32xf32>
    %403 = arith.divf %401, %402 : vector<8x32xf32>
    %404 = arith.mulf %395, %356 : vector<8x32xf32>
    %405 = arith.mulf %389, %397 : vector<8x32xf32>
    %406 = arith.addf %404, %405 : vector<8x32xf32>
    %407 = math.tanh %406 : vector<8x32xf32>
    %408 = arith.mulf %403, %407 : vector<8x32xf32>
    %409 = vector.broadcast %19 : vector<1x32xf32> to vector<8x32xf32>
    %410 = arith.mulf %408, %409 : vector<8x32xf32>
    %cst_88 = arith.constant dense<0.000000e+00> : vector<8xf32>
    %411 = vector.multi_reduction <add>, %410, %cst_88 [1] : vector<8x32xf32> to vector<8xf32>
    %412 = vector.shape_cast %411 : vector<8xf32> to vector<8x1xf32>
    %413 = arith.negf %412 : vector<8x1xf32>
    %414 = math.exp %413 : vector<8x1xf32>
    %cst_89 = arith.constant 1.000000e+00 : f32
    %415 = vector.broadcast %cst_89 : f32 to vector<8x1xf32>
    %416 = arith.addf %415, %414 : vector<8x1xf32>
    %417 = arith.divf %415, %416 : vector<8x1xf32>
    %418 = vector.broadcast %c7_i32 : i32 to vector<8x1xi32>
    %419 = arith.cmpi slt, %418, %18 : vector<8x1xi32>
    %420 = vector.broadcast %417 : vector<8x1xf32> to vector<8x32xf32>
    %421 = arith.mulf %420, %408 : vector<8x32xf32>
    %cst_90 = arith.constant 0.000000e+00 : f32
    %422 = vector.shape_cast %419 : vector<8x1xi1> to vector<8x1xi1>
    %423 = vector.broadcast %422 : vector<8x1xi1> to vector<8x32xi1>
    %424 = vector.broadcast %cst_90 : f32 to vector<8x32xf32>
    %425 = arith.select %423, %421, %424 : vector<8x32xi1>, vector<8x32xf32>
    %426 = arith.addf %376, %425 : vector<8x32xf32>
    %c8_i32 = arith.constant 8 : i32
    %c0_91 = arith.constant 0 : index
    %c0_92 = arith.constant 0 : index
    %427 = vector.load %arg9[%c0_91, %c0_92] : memref<8x32xf32, #tpu.memory_space<vmem>>, vector<8x32xf32>
    tpu.vector_store %arg9[%c0_91, %c0_92], %426 {strides = array<i32>} : memref<8x32xf32, #tpu.memory_space<vmem>>, vector<8x32xf32>,
    return
  }
  func.func @transform_0(%arg0: i32) -> (i32, i32) {
    %c0_i32 = arith.constant 0 : i32
    %c0_i32_0 = arith.constant 0 : i32
    return %c0_i32, %arg0 : i32, i32
  }
  func.func @transform_1(%arg0: i32) -> (i32, i32) {
    %c0_i32 = arith.constant 0 : i32
    %c0_i32_0 = arith.constant 0 : i32
    return %arg0, %c0_i32 : i32, i32
  }
  func.func @transform_2(%arg0: i32) -> (i32, i32) {
    %c0_i32 = arith.constant 0 : i32
    %c0_i32_0 = arith.constant 0 : i32
    %c0_i32_1 = arith.constant 0 : i32
    return %c0_i32, %c0_i32_0 : i32, i32
  }
  func.func @transform_3(%arg0: i32) -> (i32, i32) {
    %c0_i32 = arith.constant 0 : i32
    %c0_i32_0 = arith.constant 0 : i32
    %c0_i32_1 = arith.constant 0 : i32
    return %c0_i32, %c0_i32_0 : i32, i32
  }
  func.func @transform_4(%arg0: i32) -> (i32, i32) {
    %c0_i32 = arith.constant 0 : i32
    %c0_i32_0 = arith.constant 0 : i32
    %c0_i32_1 = arith.constant 0 : i32
    return %c0_i32, %c0_i32_0 : i32, i32
  }
  func.func @transform_5(%arg0: i32) -> (i32, i32) {
    %c0_i32 = arith.constant 0 : i32
    %c0_i32_0 = arith.constant 0 : i32
    %c0_i32_1 = arith.constant 0 : i32
    return %c0_i32, %c0_i32_0 : i32, i32
  }
  func.func @transform_6(%arg0: i32) -> (i32, i32) {
    %c0_i32 = arith.constant 0 : i32
    %c0_i32_0 = arith.constant 0 : i32
    %c0_i32_1 = arith.constant 0 : i32
    return %c0_i32, %c0_i32_0 : i32, i32
  }
  func.func @transform_7(%arg0: i32) -> (i32, i32) {
    %c0_i32 = arith.constant 0 : i32
    %c0_i32_0 = arith.constant 0 : i32
    %c0_i32_1 = arith.constant 0 : i32
    return %c0_i32, %c0_i32_0 : i32, i32
  }
  func.func @transform_8(%arg0: i32) -> (i32, i32) {
    %c0_i32 = arith.constant 0 : i32
    %c0_i32_0 = arith.constant 0 : i32
    return %arg0, %c0_i32 : i32, i32
  }
}

</mosaic_0001>

<bundles_post_ra>
// kernel: character_model_forward.1
= control target key start
LH: loop header
LB: loop body
LE: loop exit
PB: predicated region body
PF: predicated region fallthrough
CT: control target
= control target key end

     0   :  { %v32_v0 = vlaneseq  ;;  %vm286_vm0 = vcmask 261120   ;;  %v1297_v19 = vmov 0.0   ;;  %s1300_s9 = smov 96   ;;  %s1621_s2 = inlined_call_operand.vmem [shape: bf16[128,128], index: 2, kind: input, shape index: {}]   ;;  %s1622_s0 = inlined_call_operand.vmem [shape: s32[8,8], index: 0, kind: input, shape index: {}]   ;;  %s1623_s5 = inlined_call_operand.vmem [shape: f32[1,32], index: 5, kind: input, shape index: {}]   ;;  %s1624_s4 = inlined_call_operand.vmem [shape: f32[1,128], index: 4, kind: input, shape index: {}]   ;;  %s1625_s3 = inlined_call_operand.vmem [shape: bf16[32,128], index: 3, kind: input, shape index: {}]   ;;  %s1626_s6 = inlined_call_operand.vmem [shape: f32[1,32], index: 6, kind: input, shape index: {}]   ;;  %s1627_s7 = inlined_call_operand.vmem [shape: f32[1,32], index: 7, kind: input, shape index: {}]   ;;  %s1628_s1 = inlined_call_operand.vmem [shape: s32[8,1], index: 1, kind: input, shape index: {}]   ;;  %s1629_s8 = inlined_call_operand.vmem [shape: f32[8,32], index: 8, kind: output, shape index: {}]  }
   0x1   :  { %v1152_v1 = vld [vmem:[%s1621_s2 + $0x38] sm:$0xff]  ;;  %v1151_v3 = vld [vmem:[%s1621_s2 + $0x30] sm:$0xff]  ;;  %v1356_v4 = vld [vmem:[%s1622_s0] sm:$0xff] }
   0x2   :  { %v33_v2 = vshrl.u32 %v32_v0, 7  ;;  %213 = vmatpush.bf16.msra.mxu0 %v1152_v1  ;;  %1178 = vmatpush.bf16.msra.mxu3 %v1152_v1  ;;  %v1150_v5 = vld [vmem:[%s1621_s2 + $0x28] sm:$0xff]  ;;  %v31_v6 = vperm.slane %v1356_v4, 0  ;;  %v1149_v7 = vld [vmem:[%s1621_s2 + $0x20] sm:$0xff]  ;;  %v38_v8 = vperm.slane %v1356_v4, 1  ;;  %v1148_v9 = vld [vmem:[%s1621_s2 + $0x18] sm:$0xff] }
   0x3   :  { %v1147_v10 = vld [vmem:[%s1621_s2 + $0x10] sm:$0xff]  ;;  %v1146_v11 = vld [vmem:[%s1621_s2 + $0x8] sm:$0xff]  ;;  %v1145_v12 = vld [vmem:[%s1621_s2] sm:$0xff]  ;;  %v1403_v17 = vand.u32 127, %v32_v0 }
   0x4   :  { %1191 = vset.pattern.permute.xlu0 %v33_v2  ;;  %1192 = vset.pattern.permute.xlu1 %v33_v2  ;;  %v1381_v13 = vld [vmem:[%s1625_s3 + $0x8] sm:$0xff]  ;;  %v1197_v14 = vld [vmem:[%s1623_s5] ss:$0 sm:$0xff]  ;;  %s1298_s5 = smov 64  }
   0x5   :  { %1193 = vset.pattern.permute.xlu2 %v33_v2  ;;  %296 = vmatpush.bf16.msra.mxu1 %v1381_v13  ;;  %v1390_v15 = vld [vmem:[%s1625_s3] sm:$0xff]  ;;  %v273_v16 = vpack.c.bf16 %v1197_v14, %v1197_v14 }
   0x6   :  { %214 = vmatpush.bf16.msra.mxu0 %v1151_v3  ;;  %1179 = vmatpush.bf16.msra.mxu3 %v1151_v3  ;;  %v1413_v31 = vld [vmem:[%s1624_s4] ss:$0 sm:$0xff]  ;;  %s1299_s4 = smov 32  }
   0x7   :  { %401 = vmatpush.bf16.msra.mxu2 %v1381_v13  ;;  %v1199_v40 = vld [vmem:[%s1626_s6] ss:$0 sm:$0xff] }
   0x9   :  { %297 = vmatpush.bf16.msra.mxu1 %v1390_v15 }
   0xa   :  { %215 = vmatpush.bf16.msra.mxu0 %v1150_v5  ;;  %1180 = vmatpush.bf16.msra.mxu3 %v1150_v5 }
   0xb   :  { %402 = vmatpush.bf16.msra.mxu2 %v1390_v15 }
   0xc   :  { %36 = vperm.xlu0 %1191, %v31_v6   ;;  %1121 = vmatmul.msk.bf16.vlgmr.msra.gmra.mxu1 %vm286_vm0, %v273_v16 }
   0xd   :  { %595 = vmatpush.bf16.msrb.mxu1 %v1381_v13 }
   0xe   :  { %216 = vmatpush.bf16.msra.mxu0 %v1149_v7  ;;  %1181 = vmatpush.bf16.msra.mxu3 %v1149_v7 }
   0xf   :  { %692 = vmatpush.bf16.msrb.mxu2 %v1381_v13 }
  0x11   :  { %596 = vmatpush.bf16.msrb.mxu1 %v1390_v15 }
  0x12   :  { %217 = vmatpush.bf16.msra.mxu0 %v1148_v9  ;;  %1182 = vmatpush.bf16.msra.mxu3 %v1148_v9 }
  0x13   :  { %693 = vmatpush.bf16.msrb.mxu2 %v1390_v15 }
  0x14   :  { %43 = vperm.xlu0 %1191, %v38_v8  }
  0x15   :  { %886 = vmatpush.bf16.msra.mxu1 %v1381_v13 }
  0x16   :  { %218 = vmatpush.bf16.msra.mxu0 %v1147_v10  ;;  %1183 = vmatpush.bf16.msra.mxu3 %v1147_v10 }
  0x19   :  { %887 = vmatpush.bf16.msra.mxu1 %v1390_v15 }
  0x1a   :  { %219 = vmatpush.bf16.msra.mxu0 %v1146_v11  ;;  %1184 = vmatpush.bf16.msra.mxu3 %v1146_v11 }
  0x1e   :  { %220 = vmatpush.bf16.msra.mxu0 %v1145_v12  ;;  %1185 = vmatpush.bf16.msra.mxu3 %v1145_v12 }
  0x22   :  { %498 = vmatpush.bf16.msrb.mxu3 %v1381_v13 }
  0x26   :  { %499 = vmatpush.bf16.msrb.mxu3 %v1390_v15 }
  0x7e   :  { %v37_v18 = vpop.permute.xlu0 %36 }
  0x7f   :  { %vm89_vm1 = vcmp.eq.s32.totalorder %v37_v18, %v1403_v17 }
  0x80   :  { %v1073_v20 = vsel %vm89_vm1, 1.0, %v1297_v19 }
  0x81   :  { %v113_v22 = vpack.c.bf16 %v1073_v20, %v1073_v20 }
  0x83   :  { %v149_v25 = vunpack.c.l.b16 %v113_v22 }
  0x86   :  { %v44_v21 = vpop.permute.xlu0 %43 }
  0x87   :  { %vm90_vm2 = vcmp.eq.s32.totalorder %v44_v21, %v1403_v17 }
  0x88   :  { %v1074_v23 = vsel %vm90_vm2, 1.0, %v1297_v19 }
  0x89   :  { %v114_v24 = vpack.c.bf16 %v1074_v23, %v1074_v23  ;;  %v299_v28 = vpop.f32.mrf.mxu1 }
  0x8b   :  { %v150_v26 = vunpack.c.l.b16 %v114_v24 }
  0x8d   :  { %v157_v27 = vpack.c.b16 %v150_v26, %v149_v25 }
  0x8f   :  { %221 = vmatmul.bf16.vlgmr.msra.gmra.mxu0 %v157_v27  ;;  %v45_v27 = vperm.slane %v1356_v4, 2 }
  0x91   :  { %v301_v29 = vpop.f32.mrf.mxu1 }
  0x92   :  { %v52_v29 = vperm.slane %v1356_v4, 3 }
 0x10c   :  { %v222_v30 = vpop.f32.mrf.mxu0 }
 0x10d   :  { %v223_v33 = vadd.f32 %v1413_v31, %v222_v30 }
 0x114   :  { %v224_v32 = vpop.f32.mrf.mxu0 }
 0x115   :  { %v225_v34 = vadd.f32 %v1413_v31, %v224_v32 }
 0x117   :  { %v1158_v35 = vpack.c.bf16 %v225_v34, %v223_v33 }
 0x119   :  { %1159 = vst [vmem:[#allocation2] sm:$0xff] %v1158_v35   ;;  %v73_v35 = vperm.slane %v1356_v4, 6 }
 0x120   :  { %v271_v36 = vld [vmem:[#allocation2] sm:$0xf]  ;;  %v386_v1 = vld [vmem:[#allocation2 + $0x4] sm:$0xf] }
 0x121   :  { %v272_v37 = vunpack.c.l.bf16 %v271_v36  ;;  %v387_v2 = vunpack.c.l.bf16 %v386_v1 }
 0x123   :  { %v303_v38 = vadd.f32 %v299_v28, %v272_v37  ;;  %v80_v28 = vperm.slane %v1356_v4, 7 }
 0x125   :  { %1201 = vtanh.f32 %v303_v38  ;;  %v1122_v41 = vmul.f32 -1.442695, %v303_v38 }
 0x127   :  { %1203 = vpow2.f32 %v1122_v41 }
 0x12b   :  { %v1202_v39 = vpop.eup %1201 }
 0x12c   :  { %329 = vrot.lane.b32.xlu1 %v1202_v39, %s1298_s5 }
 0x12d   :  { %v1204_v42 = vpop.eup %1203 }
 0x12e   :  { %v307_v43 = vadd.f32 1.0, %v1204_v42 }
 0x130   :  { %1205 = vrcp.f32 %v307_v43  ;;  %v319_v49 = vand.u32 2147483648, %v307_v43  ;;  %vm313_vm4 = vweird.f32 %v307_v43  ;;  %v317_v50 = vand.u32 2147483647, %v307_v43 }
 0x132   :  { %v320_v52 = vor.u32 1.1754944e-38, %v319_v49  ;;  %vm318_vm6 = vcmp.eq.f32.partialorder %v317_v50, 8.507059e+37 }
 0x134   :  { %324 = vrot.lane.b32.xlu1 %v1199_v40, %s1299_s4 }
 0x136   :  { %v1206_v44 = vpop.eup %1205 }
 0x137   :  { %v309_v45 = vmul.f32 %v1206_v44, %v307_v43  ;;  %vm314_vm3 = vweird.f32 %v1206_v44 }
 0x138   :  { %vm315_vm5 = vmor %vm313_vm4, %vm314_vm3 }
 0x139   :  { %v310_v46 = vsub.f32 1.0, %v309_v45 }
 0x13b   :  { %v311_v47 = vmul.f32 %v1206_v44, %v310_v46 }
 0x13d   :  { %v312_v48 = vadd.f32 %v1206_v44, %v311_v47 }
 0x13f   :  { %v316_v51 = vsel %vm315_vm5, %v1206_v44, %v312_v48 }
 0x140   :  { %v321_v54 = vsel %vm318_vm6, %v320_v52, %v316_v51 }
 0x19e   :  { %v330_v53 = vpop.permute.xlu1 %329 }
 0x19f   :  { %v332_v55 = vmul.f32 %v330_v53, %v321_v54 }
 0x1a1   :  { %334 = vrot.lane.b32.xlu2 %v332_v55, %s1299_s4 }
 0x1a6   :  { %v325_v56 = vpop.permute.xlu1 %324 }
 0x1a7   :  { %v327_v57 = vmul.f32 %v325_v56, %v321_v54 }
 0x1fb   :  { %v335_v58 = vpop.permute.xlu2 %334 }
 0x1fc   :  { %v337_v59 = vadd.f32 %v335_v58, %v327_v57 }
 0x1fe   :  { %1207 = vtanh.f32 %v337_v59 }
 0x204   :  { %v1208_v60 = vpop.eup %1207 }
 0x205   :  { %340 = vrot.lane.b32.xlu2 %v1208_v60, %s1298_s5 }
 0x25f   :  { %v341_v61 = vpop.permute.xlu2 %340 }
 0x260   :  { %v1424_v62 = vmul.f32 %v341_v61, %v321_v54 }
 0x262   :  { %v388_v63 = vpack.c.bf16 %v1424_v62, %v1424_v62 }
 0x264   :  { %390 = vrot.lane.b32.xlu0 %v388_v63, %s1299_s4 }
 0x2d6   :  { %v391_v0 = vpop.permute.xlu0 %390 }
 0x2d7   :  { %1124 = vmatmul.msk.bf16.vlgmr.msra.gmra.mxu2 %vm286_vm0, %v391_v0 }
 0x2d8   :  { %983 = vmatpush.bf16.msra.mxu2 %v1381_v13 }
 0x2dc   :  { %984 = vmatpush.bf16.msra.mxu2 %v1390_v15 }
 0x35a   :  { %v404_v3 = vpop.f32.mrf.mxu2 }
 0x35b   :  { %v408_v5 = vadd.f32 %v404_v3, %v387_v2 }
 0x35d   :  { %1209 = vtanh.f32 %v408_v5  ;;  %v1125_v8 = vmul.f32 -1.442695, %v408_v5 }
 0x35f   :  { %1211 = vpow2.f32 %v1125_v8 }
 0x362   :  { %v406_v6 = vpop.f32.mrf.mxu2 }
 0x363   :  { %v1210_v7 = vpop.eup %1209 }
 0x364   :  { %431 = vrot.lane.b32.xlu1 %v1210_v7, %s1298_s5 }
 0x365   :  { %v1212_v9 = vpop.eup %1211 }
 0x366   :  { %v412_v10 = vadd.f32 1.0, %v1212_v9 }
 0x368   :  { %1213 = vrcp.f32 %v412_v10  ;;  %v424_v20 = vand.u32 2147483648, %v412_v10  ;;  %vm418_vm8 = vweird.f32 %v412_v10  ;;  %v422_v21 = vand.u32 2147483647, %v412_v10 }
 0x36a   :  { %v425_v23 = vor.u32 1.1754944e-38, %v424_v20  ;;  %vm423_vm10 = vcmp.eq.f32.partialorder %v422_v21, 8.507059e+37 }
 0x36c   :  { %50 = vperm.xlu1 %1192, %v45_v27  }
 0x36e   :  { %v1214_v11 = vpop.eup %1213 }
 0x36f   :  { %v414_v12 = vmul.f32 %v1214_v11, %v412_v10  ;;  %vm419_vm7 = vweird.f32 %v1214_v11 }
 0x370   :  { %vm420_vm9 = vmor %vm418_vm8, %vm419_vm7 }
 0x371   :  { %v415_v14 = vsub.f32 1.0, %v414_v12 }
 0x373   :  { %v416_v16 = vmul.f32 %v1214_v11, %v415_v14 }
 0x374   :  { %85 = vperm.xlu1 %1192, %v80_v28  }
 0x375   :  { %v417_v18 = vadd.f32 %v1214_v11, %v416_v16 }
 0x377   :  { %v421_v22 = vsel %vm420_vm9, %v1214_v11, %v417_v18 }
 0x378   :  { %v426_v25 = vsel %vm423_vm10, %v425_v23, %v421_v22 }
 0x379   :  { %v429_v30 = vmul.f32 %v426_v25, %v337_v59 }
 0x3d6   :  { %v432_v24 = vpop.permute.xlu1 %431 }
 0x3d7   :  { %v434_v26 = vmul.f32 %v432_v24, %v426_v25 }
 0x3d9   :  { %436 = vrot.lane.b32.xlu2 %v434_v26, %s1299_s4 }
 0x3de   :  { %v51_v36 = vpop.permute.xlu1 %50 }
 0x3df   :  { %vm91_vm11 = vcmp.eq.s32.totalorder %v51_v36, %v1403_v17 }
 0x3e0   :  { %v1075_v37 = vsel %vm91_vm11, 1.0, %v1297_v19 }
 0x3e1   :  { %57 = vperm.xlu2 %1193, %v52_v29   ;;  %v115_v38 = vpack.c.bf16 %v1075_v37, %v1075_v37 }
 0x3e3   :  { %v151_v41 = vunpack.c.l.b16 %v115_v38 }
 0x3e6   :  { %v86_v45 = vpop.permute.xlu1 %85 }
 0x3e7   :  { %vm96_vm13 = vcmp.eq.s32.totalorder %v86_v45, %v1403_v17 }
 0x3e8   :  { %v1080_v49 = vsel %vm96_vm13, 1.0, %v1297_v19 }
 0x3e9   :  { %v120_v50 = vpack.c.bf16 %v1080_v49, %v1080_v49 }
 0x3eb   :  { %v156_v53 = vunpack.c.l.b16 %v120_v50 }
 0x433   :  { %v437_v32 = vpop.permute.xlu2 %436 }
 0x434   :  { %v1437_v33 = vadd.f32 %v437_v32, %v429_v30 }
 0x436   :  { %1215 = vtanh.f32 %v1437_v33 }
 0x43b   :  { %v58_v39 = vpop.permute.xlu2 %57 }
 0x43c   :  { %v1216_v34 = vpop.eup %1215  ;;  %vm92_vm12 = vcmp.eq.s32.totalorder %v58_v39, %v1403_v17 }
 0x43d   :  { %442 = vrot.lane.b32.xlu0 %v1216_v34, %s1298_s5  ;;  %v1076_v40 = vsel %vm92_vm12, 1.0, %v1297_v19 }
 0x43e   :  { %v116_v42 = vpack.c.bf16 %v1076_v40, %v1076_v40 }
 0x440   :  { %v152_v43 = vunpack.c.l.b16 %v116_v42 }
 0x442   :  { %v158_v44 = vpack.c.b16 %v152_v43, %v151_v41  ;;  %v59_v43 = vperm.slane %v1356_v4, 4 }
 0x444   :  { %226 = vmatmul.bf16.gmra.mxu0 %v158_v44 }
 0x445   :  { %78 = vperm.xlu0 %1191, %v73_v35  }
 0x4af   :  { %v443_v46 = vpop.permute.xlu0 %442 }
 0x4b0   :  { %v1446_v47 = vmul.f32 %v443_v46, %v426_v25 }
 0x4b2   :  { %v485_v48 = vpack.c.bf16 %v1446_v47, %v1446_v47 }
 0x4b4   :  { %487 = vrot.lane.b32.xlu2 %v485_v48, %s1299_s4 }
 0x4b7   :  { %v79_v51 = vpop.permute.xlu0 %78 }
 0x4b8   :  { %vm95_vm14 = vcmp.eq.s32.totalorder %v79_v51, %v1403_v17 }
 0x4b9   :  { %v1079_v52 = vsel %vm95_vm14, 1.0, %v1297_v19 }
 0x4ba   :  { %v119_v54 = vpack.c.bf16 %v1079_v52, %v1079_v52 }
 0x4bc   :  { %v155_v55 = vunpack.c.l.b16 %v119_v54 }
 0x4be   :  { %v160_v56 = vpack.c.b16 %v156_v53, %v155_v55 }
 0x4c0   :  { %236 = vmatmul.bf16.vlgmr.msra.gmra.mxu3 %v160_v56 }
 0x4c1   :  { %789 = vmatpush.bf16.msra.mxu3 %v1381_v13  ;;  %v227_v58 = vpop.f32.mrf.mxu0 }
 0x4c2   :  { %v228_v59 = vadd.f32 %v1413_v31, %v227_v58 }
 0x4c5   :  { %790 = vmatpush.bf16.msra.mxu3 %v1390_v15 }
 0x4c9   :  { %v229_v60 = vpop.f32.mrf.mxu0 }
 0x4ca   :  { %v230_v61 = vadd.f32 %v1413_v31, %v229_v60  ;;  %v66_v60 = vperm.slane %v1356_v4, 5 }
 0x4cc   :  { %v1163_v63 = vpack.c.bf16 %v230_v61, %v228_v59 }
 0x4ce   :  { %1175 = vst [vmem:[#allocation2 + $0x8] sm:$0xff] %v1163_v63  }
 0x4d5   :  { %v483_v15 = vld [vmem:[#allocation2 + $0x8] sm:$0xff]  }
 0x4d6   :  { %v484_v5 = vunpack.c.l.bf16 %v483_v15  ;;  %v581_v39 = vunpack.c.h.bf16 %v483_v15 }
 0x50e   :  { %v488_v57 = vpop.permute.xlu2 %487 }
 0x50f   :  { %1127 = vmatmul.msk.bf16.vlgmr.msrb.gmra.mxu3 %vm286_vm0, %v488_v57 }
 0x543   :  { %v237_v0 = vpop.f32.mrf.mxu3 }
 0x544   :  { %v238_v2 = vadd.f32 %v1413_v31, %v237_v0 }
 0x54b   :  { %v239_v1 = vpop.f32.mrf.mxu3 }
 0x54c   :  { %v240_v3 = vadd.f32 %v1413_v31, %v239_v1 }
 0x54e   :  { %v1173_v13 = vpack.c.bf16 %v240_v3, %v238_v2 }
 0x550   :  { %1177 = vst [vmem:[#allocation2 + $0x18] sm:$0xff] %v1173_v13  }
 0x592   :  { %v501_v6 = vpop.f32.mrf.mxu3 }
 0x593   :  { %v505_v7 = vadd.f32 %v501_v6, %v484_v5 }
 0x595   :  { %1217 = vtanh.f32 %v505_v7  ;;  %v1128_v10 = vmul.f32 -1.442695, %v505_v7 }
 0x597   :  { %1219 = vpow2.f32 %v1128_v10 }
 0x59a   :  { %v503_v8 = vpop.f32.mrf.mxu3 }
 0x59b   :  { %v1218_v9 = vpop.eup %1217 }
 0x59c   :  { %528 = vrot.lane.b32.xlu0 %v1218_v9, %s1298_s5 }
 0x59d   :  { %v1220_v11 = vpop.eup %1219 }
 0x59e   :  { %v509_v12 = vadd.f32 1.0, %v1220_v11 }
 0x5a0   :  { %1221 = vrcp.f32 %v509_v12  ;;  %v521_v22 = vand.u32 2147483648, %v509_v12  ;;  %vm515_vm1 = vweird.f32 %v509_v12  ;;  %v519_v23 = vand.u32 2147483647, %v509_v12 }
 0x5a2   :  { %v522_v25 = vor.u32 1.1754944e-38, %v521_v22  ;;  %vm520_vm3 = vcmp.eq.f32.partialorder %v519_v23, 8.507059e+37 }
 0x5a6   :  { %v1222_v14 = vpop.eup %1221 }
 0x5a7   :  { %v511_v16 = vmul.f32 %v1222_v14, %v509_v12  ;;  %vm516_vm15 = vweird.f32 %v1222_v14 }
 0x5a8   :  { %vm517_vm2 = vmor %vm515_vm1, %vm516_vm15 }
 0x5a9   :  { %v512_v18 = vsub.f32 1.0, %v511_v16 }
 0x5ab   :  { %v513_v20 = vmul.f32 %v1222_v14, %v512_v18 }
 0x5ad   :  { %v514_v21 = vadd.f32 %v1222_v14, %v513_v20 }
 0x5af   :  { %v518_v24 = vsel %vm517_vm2, %v1222_v14, %v514_v21 }
 0x5b0   :  { %v523_v27 = vsel %vm520_vm3, %v522_v25, %v518_v24 }
 0x5b1   :  { %v526_v29 = vmul.f32 %v523_v27, %v1437_v33 }
 0x60e   :  { %v529_v26 = vpop.permute.xlu0 %528 }
 0x60f   :  { %v531_v28 = vmul.f32 %v529_v26, %v523_v27 }
 0x611   :  { %533 = vrot.lane.b32.xlu1 %v531_v28, %s1299_s4 }
 0x683   :  { %v534_v30 = vpop.permute.xlu1 %533 }
 0x684   :  { %v536_v32 = vadd.f32 %v534_v30, %v526_v29 }
 0x686   :  { %1223 = vtanh.f32 %v536_v32 }
 0x68c   :  { %v1224_v34 = vpop.eup %1223 }
 0x68d   :  { %539 = vrot.lane.b32.xlu2 %v1224_v34, %s1298_s5 }
 0x6e7   :  { %v540_v35 = vpop.permute.xlu2 %539 }
 0x6e8   :  { %v1466_v36 = vmul.f32 %v540_v35, %v523_v27 }
 0x6ea   :  { %v582_v37 = vpack.c.bf16 %v1466_v36, %v1466_v36 }
 0x6ec   :  { %584 = vrot.lane.b32.xlu0 %v582_v37, %s1299_s4 }
 0x75e   :  { %v585_v38 = vpop.permute.xlu0 %584 }
 0x75f   :  { %1130 = vmatmul.msk.bf16.vlgmr.msrb.gmra.mxu1 %vm286_vm0, %v585_v38 }
 0x7dc   :  { %v598_v40 = vpop.f32.mrf.mxu1 }
 0x7dd   :  { %v602_v33 = vadd.f32 %v598_v40, %v581_v39 }
 0x7df   :  { %1225 = vtanh.f32 %v602_v33  ;;  %v1131_v44 = vmul.f32 -1.442695, %v602_v33 }
 0x7e1   :  { %1227 = vpow2.f32 %v1131_v44 }
 0x7e4   :  { %v600_v41 = vpop.f32.mrf.mxu1 }
 0x7e5   :  { %v1226_v42 = vpop.eup %1225 }
 0x7e6   :  { %625 = vrot.lane.b32.xlu1 %v1226_v42, %s1298_s5 }
 0x7e7   :  { %v1228_v45 = vpop.eup %1227 }
 0x7e8   :  { %v606_v46 = vadd.f32 1.0, %v1228_v45 }
 0x7ea   :  { %1229 = vrcp.f32 %v606_v46  ;;  %v618_v53 = vand.u32 2147483648, %v606_v46  ;;  %vm612_vm5 = vweird.f32 %v606_v46  ;;  %v616_v54 = vand.u32 2147483647, %v606_v46 }
 0x7ec   :  { %v619_v56 = vor.u32 1.1754944e-38, %v618_v53  ;;  %vm617_vm7 = vcmp.eq.f32.partialorder %v616_v54, 8.507059e+37 }
 0x7ee   :  { %64 = vperm.xlu1 %1192, %v59_v43  }
 0x7f0   :  { %v1230_v48 = vpop.eup %1229 }
 0x7f1   :  { %v608_v49 = vmul.f32 %v1230_v48, %v606_v46  ;;  %vm613_vm4 = vweird.f32 %v1230_v48 }
 0x7f2   :  { %vm614_vm6 = vmor %vm612_vm5, %vm613_vm4 }
 0x7f3   :  { %v609_v50 = vsub.f32 1.0, %v608_v49 }
 0x7f5   :  { %v610_v51 = vmul.f32 %v1230_v48, %v609_v50 }
 0x7f7   :  { %v611_v52 = vadd.f32 %v1230_v48, %v610_v51 }
 0x7f9   :  { %v615_v55 = vsel %vm614_vm6, %v1230_v48, %v611_v52 }
 0x7fa   :  { %v620_v58 = vsel %vm617_vm7, %v619_v56, %v615_v55 }
 0x7fb   :  { %v623_v61 = vmul.f32 %v620_v58, %v536_v32 }
 0x858   :  { %v626_v57 = vpop.permute.xlu1 %625 }
 0x859   :  { %v628_v59 = vmul.f32 %v626_v57, %v620_v58 }
 0x85b   :  { %630 = vrot.lane.b32.xlu2 %v628_v59, %s1299_s4 }
 0x860   :  { %v65_v63 = vpop.permute.xlu1 %64 }
 0x861   :  { %vm93_vm8 = vcmp.eq.s32.totalorder %v65_v63, %v1403_v17 }
 0x862   :  { %v1077_v2 = vsel %vm93_vm8, 1.0, %v1297_v19 }
 0x863   :  { %71 = vperm.xlu2 %1193, %v66_v60   ;;  %v117_v15 = vpack.c.bf16 %v1077_v2, %v1077_v2 }
 0x865   :  { %v153_v6 = vunpack.c.l.b16 %v117_v15 }
 0x8b5   :  { %v631_v0 = vpop.permute.xlu2 %630 }
 0x8b6   :  { %v633_v1 = vadd.f32 %v631_v0, %v623_v61 }
 0x8b8   :  { %1231 = vtanh.f32 %v633_v1 }
 0x8bd   :  { %v72_v3 = vpop.permute.xlu2 %71 }
 0x8be   :  { %v1232_v13 = vpop.eup %1231  ;;  %vm94_vm9 = vcmp.eq.s32.totalorder %v72_v3, %v1403_v17 }
 0x8bf   :  { %v1078_v5 = vsel %vm94_vm9, 1.0, %v1297_v19  ;;  %636 = vrot.lane.b32.xlu0 %v1232_v13, %s1298_s5 }
 0x8c0   :  { %v118_v4 = vpack.c.bf16 %v1078_v5, %v1078_v5 }
 0x8c2   :  { %v154_v7 = vunpack.c.l.b16 %v118_v4 }
 0x8c4   :  { %v159_v8 = vpack.c.b16 %v154_v7, %v153_v6 }
 0x8c6   :  { %231 = vmatmul.bf16.gmra.mxu0 %v159_v8 }
 0x931   :  { %v637_v9 = vpop.permute.xlu0 %636 }
 0x932   :  { %v1481_v10 = vmul.f32 %v637_v9, %v620_v58 }
 0x934   :  { %v679_v11 = vpack.c.bf16 %v1481_v10, %v1481_v10 }
 0x936   :  { %681 = vrot.lane.b32.xlu0 %v679_v11, %s1299_s4 }
 0x943   :  { %v232_v12 = vpop.f32.mrf.mxu0 }
 0x944   :  { %v233_v17 = vadd.f32 %v1413_v31, %v232_v12 }
 0x94b   :  { %v234_v14 = vpop.f32.mrf.mxu0 }
 0x94c   :  { %v235_v19 = vadd.f32 %v1413_v31, %v234_v14 }
 0x94e   :  { %v1168_v16 = vpack.c.bf16 %v235_v19, %v233_v17  ;;  %v871_v19 = vld [vmem:[#allocation2 + $0x18] sm:$0xf] }
 0x950   :  { %1176 = vst [vmem:[#allocation2 + $0x10] sm:$0xff] %v1168_v16   ;;  %v872_v16 = vunpack.c.l.bf16 %v871_v19 }
 0x957   :  { %v677_v20 = vld [vmem:[#allocation2 + $0x10] sm:$0xff]  }
 0x958   :  { %v678_v21 = vunpack.c.l.bf16 %v677_v20  ;;  %v775_v51 = vunpack.c.h.bf16 %v677_v20 }
 0x9a8   :  { %v682_v18 = vpop.permute.xlu0 %681 }
 0x9a9   :  { %1133 = vmatmul.msk.bf16.vlgmr.msrb.gmra.mxu2 %vm286_vm0, %v682_v18 }
 0xa2c   :  { %v695_v22 = vpop.f32.mrf.mxu2 }
 0xa2d   :  { %v699_v23 = vadd.f32 %v695_v22, %v678_v21 }
 0xa2f   :  { %1233 = vtanh.f32 %v699_v23  ;;  %v1134_v26 = vmul.f32 -1.442695, %v699_v23 }
 0xa31   :  { %1235 = vpow2.f32 %v1134_v26 }
 0xa34   :  { %v697_v24 = vpop.f32.mrf.mxu2 }
 0xa35   :  { %v1234_v25 = vpop.eup %1233 }
 0xa36   :  { %722 = vrot.lane.b32.xlu1 %v1234_v25, %s1298_s5 }
 0xa37   :  { %v1236_v27 = vpop.eup %1235 }
 0xa38   :  { %v703_v28 = vadd.f32 1.0, %v1236_v27 }
 0xa3a   :  { %1237 = vrcp.f32 %v703_v28  ;;  %v715_v35 = vand.u32 2147483648, %v703_v28  ;;  %vm709_vm11 = vweird.f32 %v703_v28  ;;  %v713_v37 = vand.u32 2147483647, %v703_v28 }
 0xa3c   :  { %v716_v39 = vor.u32 1.1754944e-38, %v715_v35  ;;  %vm714_vm13 = vcmp.eq.f32.partialorder %v713_v37, 8.507059e+37 }
 0xa40   :  { %v1238_v31 = vpop.eup %1237 }
 0xa41   :  { %v705_v29 = vmul.f32 %v1238_v31, %v703_v28  ;;  %vm710_vm10 = vweird.f32 %v1238_v31 }
 0xa42   :  { %vm711_vm12 = vmor %vm709_vm11, %vm710_vm10 }
 0xa43   :  { %v706_v30 = vsub.f32 1.0, %v705_v29 }
 0xa45   :  { %v707_v32 = vmul.f32 %v1238_v31, %v706_v30 }
 0xa47   :  { %v708_v34 = vadd.f32 %v1238_v31, %v707_v32 }
 0xa49   :  { %v712_v38 = vsel %vm711_vm12, %v1238_v31, %v708_v34 }
 0xa4a   :  { %v717_v33 = vsel %vm714_vm13, %v716_v39, %v712_v38 }
 0xa4b   :  { %v720_v42 = vmul.f32 %v717_v33, %v633_v1 }
 0xaa8   :  { %v723_v40 = vpop.permute.xlu1 %722 }
 0xaa9   :  { %v725_v41 = vmul.f32 %v723_v40, %v717_v33 }
 0xaab   :  { %727 = vrot.lane.b32.xlu2 %v725_v41, %s1299_s4 }
 0xb05   :  { %v728_v43 = vpop.permute.xlu2 %727 }
 0xb06   :  { %v730_v44 = vadd.f32 %v728_v43, %v720_v42  ;;  %v1200_v43 = vld [vmem:[%s1627_s7] ss:$0 sm:$0xff] }
 0xb08   :  { %1239 = vtanh.f32 %v730_v44 }
 0xb0e   :  { %v1240_v45 = vpop.eup %1239 }
 0xb0f   :  { %733 = vrot.lane.b32.xlu0 %v1240_v45, %s1298_s5 }
 0xb81   :  { %v734_v46 = vpop.permute.xlu0 %733 }
 0xb82   :  { %v1492_v48 = vmul.f32 %v734_v46, %v717_v33 }
 0xb84   :  { %v776_v49 = vpack.c.bf16 %v1492_v48, %v1492_v48 }
 0xb86   :  { %778 = vrot.lane.b32.xlu1 %v776_v49, %s1299_s4 }
 0xbf8   :  { %v779_v50 = vpop.permute.xlu1 %778 }
 0xbf9   :  { %1136 = vmatmul.msk.bf16.vlgmr.msra.gmra.mxu3 %vm286_vm0, %v779_v50 }
 0xc7c   :  { %v792_v52 = vpop.f32.mrf.mxu3 }
 0xc7d   :  { %v796_v53 = vadd.f32 %v792_v52, %v775_v51 }
 0xc7f   :  { %1241 = vtanh.f32 %v796_v53  ;;  %v1137_v56 = vmul.f32 -1.442695, %v796_v53  ;;  %v968_v53 = vld [vmem:[#allocation2 + $0x1c] sm:$0xf] }
 0xc81   :  { %1243 = vpow2.f32 %v1137_v56 }
 0xc84   :  { %v794_v54 = vpop.f32.mrf.mxu3 }
 0xc85   :  { %v1242_v55 = vpop.eup %1241  ;;  %v969_v54 = vunpack.c.l.bf16 %v968_v53 }
 0xc86   :  { %819 = vrot.lane.b32.xlu2 %v1242_v55, %s1298_s5 }
 0xc87   :  { %v1244_v57 = vpop.eup %1243 }
 0xc88   :  { %v800_v58 = vadd.f32 1.0, %v1244_v57 }
 0xc8a   :  { %1245 = vrcp.f32 %v800_v58  ;;  %v812_v1 = vand.u32 2147483648, %v800_v58  ;;  %vm806_vm15 = vweird.f32 %v800_v58  ;;  %v810_v2 = vand.u32 2147483647, %v800_v58 }
 0xc8c   :  { %v813_v13 = vor.u32 1.1754944e-38, %v812_v1  ;;  %vm811_vm2 = vcmp.eq.f32.partialorder %v810_v2, 8.507059e+37 }
 0xc90   :  { %v1246_v59 = vpop.eup %1245 }
 0xc91   :  { %v802_v60 = vmul.f32 %v1246_v59, %v800_v58  ;;  %vm807_vm14 = vweird.f32 %v1246_v59 }
 0xc92   :  { %vm808_vm1 = vmor %vm806_vm15, %vm807_vm14 }
 0xc93   :  { %v803_v61 = vsub.f32 1.0, %v802_v60 }
 0xc95   :  { %v804_v63 = vmul.f32 %v1246_v59, %v803_v61 }
 0xc97   :  { %v805_v0 = vadd.f32 %v1246_v59, %v804_v63 }
 0xc99   :  { %v809_v3 = vsel %vm808_vm1, %v1246_v59, %v805_v0 }
 0xc9a   :  { %v814_v5 = vsel %vm811_vm2, %v813_v13, %v809_v3 }
 0xc9b   :  { %v817_v6 = vmul.f32 %v814_v5, %v730_v44 }
 0xce0   :  { %v820_v15 = vpop.permute.xlu2 %819 }
 0xce1   :  { %v822_v4 = vmul.f32 %v820_v15, %v814_v5 }
 0xce3   :  { %824 = vrot.lane.b32.xlu0 %v822_v4, %s1299_s4 }
 0xd55   :  { %v825_v7 = vpop.permute.xlu0 %824 }
 0xd56   :  { %v827_v8 = vadd.f32 %v825_v7, %v817_v6 }
 0xd58   :  { %1247 = vtanh.f32 %v827_v8 }
 0xd5e   :  { %v1248_v9 = vpop.eup %1247 }
 0xd5f   :  { %830 = vrot.lane.b32.xlu1 %v1248_v9, %s1298_s5 }
 0xdd1   :  { %v831_v11 = vpop.permute.xlu1 %830 }
 0xdd2   :  { %v1501_v12 = vmul.f32 %v831_v11, %v814_v5 }
 0xdd4   :  { %v873_v14 = vpack.c.bf16 %v1501_v12, %v1501_v12 }
 0xdd6   :  { %875 = vrot.lane.b32.xlu2 %v873_v14, %s1299_s4 }
 0xe30   :  { %v876_v17 = vpop.permute.xlu2 %875 }
 0xe31   :  { %1139 = vmatmul.msk.bf16.vlgmr.msra.gmra.mxu1 %vm286_vm0, %v876_v17 }
 0xeae   :  { %v889_v18 = vpop.f32.mrf.mxu1 }
 0xeaf   :  { %v893_v20 = vadd.f32 %v889_v18, %v872_v16 }
 0xeb1   :  { %1249 = vtanh.f32 %v893_v20  ;;  %v1140_v23 = vmul.f32 -1.442695, %v893_v20 }
 0xeb3   :  { %1251 = vpow2.f32 %v1140_v23 }
 0xeb6   :  { %v891_v21 = vpop.f32.mrf.mxu1 }
 0xeb7   :  { %v1250_v22 = vpop.eup %1249 }
 0xeb8   :  { %916 = vrot.lane.b32.xlu0 %v1250_v22, %s1298_s5 }
 0xeb9   :  { %v1252_v24 = vpop.eup %1251 }
 0xeba   :  { %v897_v25 = vadd.f32 1.0, %v1252_v24 }
 0xebc   :  { %1253 = vrcp.f32 %v897_v25  ;;  %v909_v30 = vand.u32 2147483648, %v897_v25  ;;  %vm903_vm4 = vweird.f32 %v897_v25  ;;  %v907_v32 = vand.u32 2147483647, %v897_v25 }
 0xebe   :  { %v910_v35 = vor.u32 1.1754944e-38, %v909_v30  ;;  %vm908_vm6 = vcmp.eq.f32.partialorder %v907_v32, 8.507059e+37 }
 0xec2   :  { %v1254_v26 = vpop.eup %1253 }
 0xec3   :  { %v899_v27 = vmul.f32 %v1254_v26, %v897_v25  ;;  %vm904_vm3 = vweird.f32 %v1254_v26 }
 0xec4   :  { %vm905_vm5 = vmor %vm903_vm4, %vm904_vm3 }
 0xec5   :  { %v900_v28 = vsub.f32 1.0, %v899_v27 }
 0xec7   :  { %v901_v31 = vmul.f32 %v1254_v26, %v900_v28 }
 0xec9   :  { %v902_v29 = vadd.f32 %v1254_v26, %v901_v31 }
 0xecb   :  { %v906_v34 = vsel %vm905_vm5, %v1254_v26, %v902_v29 }
 0xecc   :  { %v911_v38 = vsel %vm908_vm6, %v910_v35, %v906_v34  ;;  %v1301_v35 = vmov 0  }
 0xecd   :  { %v914_v40 = vmul.f32 %v911_v38, %v827_v8  ;;  %1194 = vset.pattern.permute.xlu2 %v1301_v35  ;;  %1195 = vset.pattern.permute.xlu0 %v1301_v35 }
 0xece   :  { %1196 = vset.pattern.permute.xlu1 %v1301_v35 }
 0xf2a   :  { %v917_v37 = vpop.permute.xlu0 %916 }
 0xf2b   :  { %v919_v39 = vmul.f32 %v917_v37, %v911_v38  ;;  %v262_v37 = vld [vmem:[%s1628_s1] sm:$0xff] }
 0xf2c   :  { %vm667_vm11 = vcmp.gt.s32.totalorder %v262_v37, 3  ;;  %vm376_vm12 = vcmp.gt.s32.totalorder %v262_v37, 0  ;;  %vm473_vm13 = vcmp.gt.s32.totalorder %v262_v37, 1  ;;  %vm570_vm14 = vcmp.gt.s32.totalorder %v262_v37, 2 }
 0xf2d   :  { %921 = vrot.lane.b32.xlu1 %v919_v39, %s1299_s4  ;;  %vm764_vm15 = vcmp.gt.s32.totalorder %v262_v37, 4  ;;  %vm861_vm1 = vcmp.gt.s32.totalorder %v262_v37, 5  ;;  %vm1055_vm2 = vcmp.gt.s32.totalorder %v262_v37, 7  ;;  %vm958_vm3 = vcmp.gt.s32.totalorder %v262_v37, 6 }
 0xf2e   :  { %v766_v53 = vsel %vm764_vm15, 1, %v1301_v35 }
 0xf9f   :  { %v922_v33 = vpop.permute.xlu1 %921 }
 0xfa0   :  { %v1509_v41 = vadd.f32 %v922_v33, %v914_v40 }
 0xfa2   :  { %1255 = vtanh.f32 %v1509_v41 }
 0xfa8   :  { %v1256_v42 = vpop.eup %1255 }
 0xfa9   :  { %927 = vrot.lane.b32.xlu2 %v1256_v42, %s1298_s5 }
 0xfb1   :  { %346 = vrot.lane.b32.xlu2 %v1200_v43, %s1300_s9 }
0x1003   :  { %v928_v44 = vpop.permute.xlu2 %927 }
0x1004   :  { %v1516_v45 = vmul.f32 %v928_v44, %v911_v38  ;;  %v669_v38 = vsel %vm667_vm11, 1, %v1301_v35 }
0x1006   :  { %v970_v46 = vpack.c.bf16 %v1516_v45, %v1516_v45 }
0x1008   :  { %972 = vrot.lane.b32.xlu0 %v970_v46, %s1299_s4 }
0x100b   :  { %v1521_v49 = vpop.permute.xlu2 %346 }
0x100c   :  { %v349_v50 = vmul.f32 %v1521_v49, %v1424_v62  ;;  %v543_v51 = vmul.f32 %v1466_v36, %v1521_v49  ;;  %v640_v1 = vmul.f32 %v1481_v10, %v1521_v49  ;;  %v834_v3 = vmul.f32 %v1501_v12, %v1521_v49 }
0x100d   :  { %v446_v18 = vmul.f32 %v1446_v47, %v1521_v49  ;;  %v737_v29 = vmul.f32 %v1492_v48, %v1521_v49  ;;  %v931_v30 = vmul.f32 %v1516_v45, %v1521_v49 }
0x1010   :  { %351 = vrot.lane.b32.xlu0 %v349_v50, %s1299_s4  ;;  %v378_v50 = vsel %vm376_vm12, 1, %v1301_v35 }
0x1018   :  { %545 = vrot.lane.b32.xlu0 %v543_v51, %s1299_s4  ;;  %v475_v51 = vsel %vm473_vm13, 1, %v1301_v35 }
0x107a   :  { %v973_v52 = vpop.permute.xlu0 %972 }
0x107b   :  { %1142 = vmatmul.msk.bf16.vlgmr.msra.gmra.mxu2 %vm286_vm0, %v973_v52 }
0x1082   :  { %v352_v59 = vpop.permute.xlu0 %351 }
0x1083   :  { %v354_v60 = vsel %vm286_vm0, %v352_v59, 0.0 }
0x108a   :  { %v546_v61 = vpop.permute.xlu0 %545 }
0x108b   :  { %v548_v63 = vsel %vm286_vm0, %v546_v61, 0.0 }
0x10fe   :  { %v986_v55 = vpop.f32.mrf.mxu2 }
0x10ff   :  { %v990_v56 = vadd.f32 %v986_v55, %v969_v54  ;;  %v863_v54 = vsel %vm861_vm1, 1, %v1301_v35 }
0x1101   :  { %1257 = vtanh.f32 %v990_v56  ;;  %v1143_v0 = vmul.f32 -1.442695, %v990_v56 }
0x1103   :  { %1259 = vpow2.f32 %v1143_v0 }
0x1106   :  { %v988_v57 = vpop.f32.mrf.mxu2 }
0x1107   :  { %v1258_v58 = vpop.eup %1257 }
0x1108   :  { %1013 = vrot.lane.b32.xlu1 %v1258_v58, %s1298_s5 }
0x1109   :  { %v1260_v2 = vpop.eup %1259 }
0x110a   :  { %v994_v13 = vadd.f32 1.0, %v1260_v2 }
0x110c   :  { %1261 = vrcp.f32 %v994_v13  ;;  %v1006_v8 = vand.u32 2147483648, %v994_v13  ;;  %vm1000_vm8 = vweird.f32 %v994_v13  ;;  %v1004_v9 = vand.u32 2147483647, %v994_v13 }
0x110e   :  { %v1007_v14 = vor.u32 1.1754944e-38, %v1006_v8  ;;  %vm1005_vm10 = vcmp.eq.f32.partialorder %v1004_v9, 8.507059e+37 }
0x1112   :  { %v1262_v15 = vpop.eup %1261 }
0x1113   :  { %v996_v5 = vmul.f32 %v1262_v15, %v994_v13  ;;  %vm1001_vm7 = vweird.f32 %v1262_v15 }
0x1114   :  { %vm1002_vm9 = vmor %vm1000_vm8, %vm1001_vm7 }
0x1115   :  { %v997_v4 = vsub.f32 1.0, %v996_v5  ;;  %v1057_v5 = vsel %vm1055_vm2, 1, %v1301_v35 }
0x1117   :  { %v998_v6 = vmul.f32 %v1262_v15, %v997_v4 }
0x1119   :  { %v999_v7 = vadd.f32 %v1262_v15, %v998_v6 }
0x111b   :  { %v1003_v11 = vsel %vm1002_vm9, %v1262_v15, %v999_v7  ;;  %v960_v7 = vsel %vm958_vm3, 1, %v1301_v35 }
0x111c   :  { %v1008_v19 = vsel %vm1005_vm10, %v1007_v14, %v1003_v11 }
0x111d   :  { %v1011_v24 = vmul.f32 %v1008_v19, %v1509_v41 }
0x1132   :  { %355 = vadd.xlane.f32.xlu1 %v354_v60 }
0x113a   :  { %549 = vadd.xlane.f32.xlu1 %v548_v63 }
0x1153   :  { %642 = vrot.lane.b32.xlu1 %v640_v1, %s1299_s4 }
0x115b   :  { %836 = vrot.lane.b32.xlu1 %v834_v3, %s1299_s4 }
0x117a   :  { %v1014_v17 = vpop.permute.xlu1 %1013 }
0x117b   :  { %v1016_v16 = vmul.f32 %v1014_v17, %v1008_v19 }
0x117d   :  { %1018 = vrot.lane.b32.xlu2 %v1016_v16, %s1299_s4 }
0x1185   :  { %448 = vrot.lane.b32.xlu2 %v446_v18, %s1299_s4 }
0x11a5   :  { %v356_v20 = vpop.xlane.xlu1 %355 }
0x11a6   :  { %v1123_v55 = vmul.f32 -1.442695, %v356_v20 }
0x11ad   :  { %v550_v21 = vpop.xlane.xlu1 %549 }
0x11ae   :  { %v1129_v58 = vmul.f32 -1.442695, %v550_v21 }
0x11c5   :  { %v643_v22 = vpop.permute.xlu1 %642 }
0x11c6   :  { %v645_v23 = vsel %vm286_vm0, %v643_v22, 0.0 }
0x11c7   :  { %646 = vadd.xlane.f32.xlu0 %v645_v23 }
0x11cd   :  { %v837_v32 = vpop.permute.xlu1 %836 }
0x11ce   :  { %v839_v34 = vsel %vm286_vm0, %v837_v32, 0.0 }
0x11d7   :  { %v1019_v25 = vpop.permute.xlu2 %1018 }
0x11d8   :  { %v1021_v26 = vadd.f32 %v1019_v25, %v1011_v24 }
0x11da   :  { %1263 = vtanh.f32 %v1021_v26 }
0x11db   :  { %1265 = vpow2.f32 %v1123_v55 }
0x11df   :  { %v449_v27 = vpop.permute.xlu2 %448 }
0x11e0   :  { %v1264_v28 = vpop.eup %1263  ;;  %v451_v31 = vsel %vm286_vm0, %v449_v27, 0.0 }
0x11e1   :  { %452 = vadd.xlane.f32.xlu2 %v451_v31  ;;  %1024 = vrot.lane.b32.xlu0 %v1264_v28, %s1298_s5  ;;  %v1266_v60 = vpop.eup %1265 }
0x11e2   :  { %v360_v0 = vadd.f32 1.0, %v1266_v60 }
0x11e4   :  { %vm366_vm6 = vweird.f32 %v360_v0  ;;  %v372_v26 = vand.u32 2147483648, %v360_v0 }
0x11f9   :  { %739 = vrot.lane.b32.xlu2 %v737_v29, %s1299_s4  ;;  %v370_v29 = vand.u32 2147483647, %v360_v0 }
0x11fb   :  { %vm371_vm10 = vcmp.eq.f32.partialorder %v370_v29, 8.507059e+37 }
0x1201   :  { %933 = vrot.lane.b32.xlu2 %v931_v30, %s1299_s4 }
0x122a   :  { %840 = vadd.xlane.f32.xlu2 %v839_v34 }
0x123a   :  { %v647_v39 = vpop.xlane.xlu0 %646 }
0x123b   :  { %v1132_v63 = vmul.f32 -1.442695, %v647_v39 }
0x1242   :  { %671 = vperm.xlu2 %1194, %v669_v38   ;;  %v373_v38 = vor.u32 1.1754944e-38, %v372_v26 }
0x124a   :  { %1059 = vperm.xlu2 %1194, %v1057_v5  }
0x1253   :  { %v1025_v40 = vpop.permute.xlu0 %1024 }
0x1254   :  { %v1561_v33 = vmul.f32 %v1025_v40, %v1008_v19  ;;  %v453_v41 = vpop.xlane.xlu2 %452 }
0x1255   :  { %v1126_v56 = vmul.f32 -1.442695, %v453_v41 }
0x1256   :  { %v1028_v42 = vmul.f32 %v1561_v33, %v1521_v49  ;;  %v572_v49 = vsel %vm570_vm14, 1, %v1301_v35 }
0x1257   :  { %1267 = vpow2.f32 %v1126_v56 }
0x1258   :  { %1030 = vrot.lane.b32.xlu1 %v1028_v42, %s1299_s4  ;;  %1269 = vpow2.f32 %v1129_v58 }
0x1259   :  { %1271 = vpow2.f32 %v1132_v63 }
0x125a   :  { %1273 = vrcp.f32 %v360_v0 }
0x125c   :  { %v740_v43 = vpop.permute.xlu2 %739 }
0x125d   :  { %v742_v52 = vsel %vm286_vm0, %v740_v43, 0.0  ;;  %v1268_v61 = vpop.eup %1267 }
0x125e   :  { %v457_v1 = vadd.f32 1.0, %v1268_v61  ;;  %v1270_v2 = vpop.eup %1269 }
0x125f   :  { %v1272_v3 = vpop.eup %1271  ;;  %v1574_v13 = vadd.f32 1.0, %v1270_v2 }
0x1260   :  { %1275 = vrcp.f32 %v457_v1  ;;  %v1274_v15 = vpop.eup %1273  ;;  %v1577_v6 = vadd.f32 1.0, %v1272_v3  ;;  %v469_v27 = vand.u32 2147483648, %v457_v1  ;;  %vm463_vm8 = vweird.f32 %v457_v1 }
0x1261   :  { %1277 = vrcp.f32 %v1574_v13  ;;  %v362_v8 = vmul.f32 %v1274_v15, %v360_v0  ;;  %vm367_vm4 = vweird.f32 %v1274_v15  ;;  %v467_v32 = vand.u32 2147483647, %v457_v1 }
0x1262   :  { %1279 = vrcp.f32 %v1577_v6  ;;  %vm1586_vm7 = vmor %vm366_vm6, %vm367_vm4  ;;  %v470_v39 = vor.u32 1.1754944e-38, %v469_v27  ;;  %vm560_vm14 = vweird.f32 %v1574_v13  ;;  %vm657_vm3 = vweird.f32 %v1577_v6 }
0x1263   :  { %v363_v14 = vsub.f32 1.0, %v362_v8  ;;  %vm468_vm11 = vcmp.eq.f32.partialorder %v467_v32, 8.507059e+37  ;;  %v661_v56 = vand.u32 2147483647, %v1577_v6 }
0x1264   :  { %v934_v44 = vpop.permute.xlu2 %933 }
0x1265   :  { %v936_v46 = vsel %vm286_vm0, %v934_v44, 0.0  ;;  %v364_v20 = vmul.f32 %v1274_v15, %v363_v14  ;;  %vm662_vm6 = vcmp.eq.f32.partialorder %v661_v56, 8.507059e+37 }
0x1266   :  { %937 = vadd.xlane.f32.xlu0 %v936_v46  ;;  %v1276_v4 = vpop.eup %1275  ;;  %v564_v46 = vand.u32 2147483647, %v1574_v13 }
0x1267   :  { %v459_v9 = vmul.f32 %v1276_v4, %v457_v1  ;;  %v1278_v11 = vpop.eup %1277  ;;  %v365_v24 = vadd.f32 %v1274_v15, %v364_v20  ;;  %vm464_vm5 = vweird.f32 %v1276_v4 }
0x1268   :  { %v1280_v16 = vpop.eup %1279  ;;  %v556_v18 = vmul.f32 %v1278_v11, %v1574_v13  ;;  %vm465_vm9 = vmor %vm463_vm8, %vm464_vm5  ;;  %vm561_vm12 = vweird.f32 %v1278_v11  ;;  %vm565_vm5 = vcmp.eq.f32.partialorder %v564_v46, 8.507059e+37 }
0x1269   :  { %v460_v17 = vsub.f32 1.0, %v459_v9  ;;  %v653_v22 = vmul.f32 %v1280_v16, %v1577_v6  ;;  %v369_v35 = vsel %vm1586_vm7, %v1274_v15, %v365_v24  ;;  %vm658_vm15 = vweird.f32 %v1280_v16  ;;  %vm562_vm1 = vmor %vm560_vm14, %vm561_vm12 }
0x126a   :  { %v557_v23 = vsub.f32 1.0, %v556_v18  ;;  %v374_v42 = vsel %vm371_vm10, %v373_v38, %v369_v35  ;;  %vm659_vm4 = vmor %vm657_vm3, %vm658_vm15 }
0x126b   :  { %v461_v21 = vmul.f32 %v1276_v4, %v460_v17  ;;  %v654_v28 = vsub.f32 1.0, %v653_v22 }
0x126c   :  { %v558_v34 = vmul.f32 %v1278_v11, %v557_v23 }
0x126d   :  { %v462_v25 = vadd.f32 %v1276_v4, %v461_v21  ;;  %v655_v41 = vmul.f32 %v1280_v16, %v654_v28 }
0x126e   :  { %v559_v44 = vadd.f32 %v1278_v11, %v558_v34 }
0x126f   :  { %v466_v37 = vsel %vm465_vm9, %v1276_v4, %v462_v25 }
0x1270   :  { %v471_v43 = vsel %vm468_vm11, %v470_v39, %v466_v37  ;;  %v563_v55 = vsel %vm562_vm1, %v1278_v11, %v559_v44 }
0x127a   :  { %380 = vperm.xlu0 %1195, %v378_v50   ;;  %v566_v50 = vand.u32 2147483648, %v1574_v13 }
0x127c   :  { %v567_v60 = vor.u32 1.1754944e-38, %v566_v50 }
0x127e   :  { %v568_v63 = vsel %vm565_vm5, %v567_v60, %v563_v55 }
0x127f   :  { %v571_v1 = vmul.f32 %v568_v63, %v1466_v36 }
0x1282   :  { %477 = vperm.xlu0 %1195, %v475_v51   ;;  %743 = vadd.xlane.f32.xlu1 %v742_v52  ;;  %v656_v51 = vadd.f32 %v1280_v16, %v655_v41  ;;  %v377_v52 = vmul.f32 %v374_v42, %v1424_v62 }
0x1284   :  { %v660_v61 = vsel %vm659_vm4, %v1280_v16, %v656_v51 }
0x128a   :  { %574 = vperm.xlu0 %1195, %v572_v49   ;;  %v474_v49 = vmul.f32 %v471_v43, %v1446_v47 }
0x1292   :  { %768 = vperm.xlu0 %1195, %v766_v53  }
0x129b   :  { %865 = vperm.xlu1 %1196, %v863_v54   ;;  %v663_v54 = vand.u32 2147483648, %v1577_v6 }
0x129d   :  { %v841_v40 = vpop.xlane.xlu2 %840  ;;  %v664_v62 = vor.u32 1.1754944e-38, %v663_v54 }
0x129e   :  { %v1138_v8 = vmul.f32 -1.442695, %v841_v40 }
0x129f   :  { %v665_v0 = vsel %vm662_vm6, %v664_v62, %v660_v61 }
0x12a0   :  { %v668_v3 = vmul.f32 %v665_v0, %v1481_v10 }
0x12a5   :  { %v672_v47 = vpop.permute.xlu2 %671 }
0x12a6   :  { %vm673_vm7 = vcmp.eq.s32.totalorder %v672_v47, 1 }
0x12a7   :  { %v674_v5 = vsel %vm673_vm7, %v668_v3, 0.0 }
0x12ca   :  { %v1031_v57 = vpop.permute.xlu1 %1030 }
0x12cb   :  { %v1033_v59 = vsel %vm286_vm0, %v1031_v57, 0.0 }
0x12cc   :  { %1034 = vadd.xlane.f32.xlu0 %v1033_v59 }
0x12d9   :  { %v1582_v19 = vpop.xlane.xlu0 %937 }
0x12da   :  { %v1141_v9 = vmul.f32 -1.442695, %v1582_v19 }
0x12e0   :  { %962 = vperm.xlu0 %1195, %v960_v7  }
0x12ec   :  { %v381_v30 = vpop.permute.xlu0 %380 }
0x12ed   :  { %vm382_vm13 = vcmp.eq.s32.totalorder %v381_v30, 1 }
0x12ee   :  { %v383_v57 = vsel %vm382_vm13, %v377_v52, 0.0 }
0x12f4   :  { %v478_v53 = vpop.permute.xlu0 %477 }
0x12f5   :  { %vm479_vm2 = vcmp.eq.s32.totalorder %v478_v53, 1  ;;  %v744_v6 = vpop.xlane.xlu1 %743 }
0x12f6   :  { %v480_v58 = vsel %vm479_vm2, %v474_v49, 0.0  ;;  %v1135_v7 = vmul.f32 -1.442695, %v744_v6 }
0x12f7   :  { %v481_v59 = vadd.f32 %v480_v58, %v383_v57 }
0x12f8   :  { %1281 = vpow2.f32 %v1135_v7 }
0x12f9   :  { %1283 = vpow2.f32 %v1138_v8 }
0x12fa   :  { %1285 = vpow2.f32 %v1141_v9  ;;  %v1060_v9 = vpop.permute.xlu2 %1059 }
0x12fc   :  { %v575_v2 = vpop.permute.xlu0 %574 }
0x12fd   :  { %vm576_vm8 = vcmp.eq.s32.totalorder %v575_v2, 1 }
0x12fe   :  { %v577_v13 = vsel %vm576_vm8, %v571_v1, 0.0  ;;  %v1282_v11 = vpop.eup %1281 }
0x12ff   :  { %v578_v15 = vadd.f32 %v577_v13, %v481_v59  ;;  %v748_v36 = vadd.f32 1.0, %v1282_v11  ;;  %v1284_v14 = vpop.eup %1283 }
0x1300   :  { %v1286_v17 = vpop.eup %1285  ;;  %v845_v16 = vadd.f32 1.0, %v1284_v14 }
0x1301   :  { %v1602_v4 = vadd.f32 %v674_v5, %v578_v15  ;;  %1287 = vrcp.f32 %v748_v36  ;;  %v942_v10 = vadd.f32 1.0, %v1286_v17  ;;  %v760_v32 = vand.u32 2147483648, %v748_v36 }
0x1302   :  { %1289 = vrcp.f32 %v845_v16  ;;  %vm754_vm10 = vweird.f32 %v748_v36  ;;  %v758_v35 = vand.u32 2147483647, %v748_v36  ;;  %vm851_vm15 = vweird.f32 %v845_v16 }
0x1303   :  { %1291 = vrcp.f32 %v942_v10  ;;  %v761_v41 = vor.u32 1.1754944e-38, %v760_v32  ;;  %v857_v46 = vand.u32 2147483648, %v845_v16  ;;  %v954_v50 = vand.u32 2147483648, %v942_v10 }
0x1304   :  { %v769_v20 = vpop.permute.xlu0 %768  ;;  %vm759_vm12 = vcmp.eq.f32.partialorder %v758_v35, 8.507059e+37  ;;  %v855_v49 = vand.u32 2147483647, %v845_v16  ;;  %vm948_vm2 = vweird.f32 %v942_v10  ;;  %v952_v53 = vand.u32 2147483647, %v942_v10 }
0x1305   :  { %vm770_vm4 = vcmp.eq.s32.totalorder %v769_v20, 1  ;;  %v858_v58 = vor.u32 1.1754944e-38, %v857_v46  ;;  %v955_v59 = vor.u32 1.1754944e-38, %v954_v50 }
0x1306   :  { %vm856_vm5 = vcmp.eq.f32.partialorder %v855_v49, 8.507059e+37  ;;  %vm953_vm6 = vcmp.eq.f32.partialorder %v952_v53, 8.507059e+37 }
0x1307   :  { %v1288_v18 = vpop.eup %1287 }
0x1308   :  { %v750_v21 = vmul.f32 %v1288_v18, %v748_v36  ;;  %v1290_v22 = vpop.eup %1289  ;;  %vm755_vm9 = vweird.f32 %v1288_v18 }
0x1309   :  { %v1292_v24 = vpop.eup %1291  ;;  %v847_v28 = vmul.f32 %v1290_v22, %v845_v16  ;;  %vm756_vm11 = vmor %vm754_vm10, %vm755_vm9  ;;  %vm852_vm13 = vweird.f32 %v1290_v22 }
0x130a   :  { %v751_v23 = vsub.f32 1.0, %v750_v21  ;;  %v944_v19 = vmul.f32 %v1292_v24, %v942_v10  ;;  %vm949_vm14 = vweird.f32 %v1292_v24  ;;  %vm1606_vm1 = vmor %vm851_vm15, %vm852_vm13  ;;  %vm1061_vm13 = vcmp.eq.s32.totalorder %v1060_v9, 1 }
0x130b   :  { %v848_v29 = vsub.f32 1.0, %v847_v28  ;;  %vm950_vm3 = vmor %vm948_vm2, %vm949_vm14 }
0x130c   :  { %v752_v27 = vmul.f32 %v1288_v18, %v751_v23  ;;  %v945_v30 = vsub.f32 1.0, %v944_v19 }
0x130d   :  { %v849_v39 = vmul.f32 %v1290_v22, %v848_v29 }
0x130e   :  { %v753_v31 = vadd.f32 %v1288_v18, %v752_v27  ;;  %v946_v40 = vmul.f32 %v1292_v24, %v945_v30 }
0x130f   :  { %v850_v43 = vadd.f32 %v1290_v22, %v849_v39 }
0x1310   :  { %v757_v38 = vsel %vm756_vm11, %v1288_v18, %v753_v31  ;;  %v947_v44 = vadd.f32 %v1292_v24, %v946_v40 }
0x1311   :  { %v762_v42 = vsel %vm759_vm12, %v761_v41, %v757_v38  ;;  %v854_v55 = vsel %vm1606_vm1, %v1290_v22, %v850_v43 }
0x1312   :  { %v765_v51 = vmul.f32 %v762_v42, %v1492_v48  ;;  %v951_v56 = vsel %vm950_vm3, %v1292_v24, %v947_v44  ;;  %v866_v48 = vpop.permute.xlu1 %865  ;;  %v859_v63 = vsel %vm856_vm5, %v858_v58, %v854_v55 }
0x1313   :  { %v956_v47 = vsel %vm953_vm6, %v955_v59, %v951_v56  ;;  %vm867_vm8 = vcmp.eq.s32.totalorder %v866_v48, 1  ;;  %v862_v13 = vmul.f32 %v859_v63, %v1501_v12 }
0x1314   :  { %v771_v60 = vsel %vm770_vm4, %v765_v51, 0.0  ;;  %v959_v15 = vmul.f32 %v956_v47, %v1516_v45 }
0x1315   :  { %v772_v3 = vadd.f32 %v771_v60, %v1602_v4  ;;  %v868_v7 = vsel %vm867_vm8, %v862_v13, 0.0 }
0x1317   :  { %v869_v36 = vadd.f32 %v868_v7, %v772_v3 }
0x133f   :  { %v1035_v25 = vpop.xlane.xlu0 %1034 }
0x1340   :  { %v1144_v26 = vmul.f32 -1.442695, %v1035_v25 }
0x1342   :  { %1293 = vpow2.f32 %v1144_v26 }
0x1348   :  { %v1294_v34 = vpop.eup %1293 }
0x1349   :  { %v1039_v37 = vadd.f32 1.0, %v1294_v34 }
0x134b   :  { %1295 = vrcp.f32 %v1039_v37  ;;  %v1051_v0 = vand.u32 2147483648, %v1039_v37  ;;  %v1049_v2 = vand.u32 2147483647, %v1039_v37  ;;  %vm1045_vm10 = vweird.f32 %v1039_v37 }
0x134d   :  { %v1052_v6 = vor.u32 1.1754944e-38, %v1051_v0  ;;  %vm1050_vm12 = vcmp.eq.f32.partialorder %v1049_v2, 8.507059e+37 }
0x1351   :  { %v1296_v54 = vpop.eup %1295 }
0x1352   :  { %v1041_v57 = vmul.f32 %v1296_v54, %v1039_v37  ;;  %v963_v61 = vpop.permute.xlu0 %962  ;;  %vm1046_vm7 = vweird.f32 %v1296_v54 }
0x1353   :  { %vm964_vm9 = vcmp.eq.s32.totalorder %v963_v61, 1  ;;  %vm1047_vm11 = vmor %vm1045_vm10, %vm1046_vm7 }
0x1354   :  { %v1042_v62 = vsub.f32 1.0, %v1041_v57  ;;  %v965_v8 = vsel %vm964_vm9, %v959_v15, 0.0 }
0x1355   :  { %v966_v4 = vadd.f32 %v965_v8, %v869_v36 }
0x1356   :  { %v1043_v1 = vmul.f32 %v1296_v54, %v1042_v62 }
0x1358   :  { %v1044_v5 = vadd.f32 %v1296_v54, %v1043_v1 }
0x135a   :  { %v1048_v11 = vsel %vm1047_vm11, %v1296_v54, %v1044_v5 }
0x135b   :  { %v1053_v14 = vsel %vm1050_vm12, %v1052_v6, %v1048_v11 }
0x135c   :  { %v1056_v17 = vmul.f32 %v1053_v14, %v1561_v33 }
0x135e   :  { %v1062_v16 = vsel %vm1061_vm13, %v1056_v17, 0.0 }
0x135f   :  { %v1063_v10 = vadd.f32 %v1062_v16, %v966_v4 }
0x1361   :  { %1065 = vrot.lane.b32.xlu0 %v1063_v10, %s1299_s4 }
0x13d3   :  { %v1066_v12 = vpop.permute.xlu0 %1065 }
0x13d4   :  { %1068 = vst.msk [vmem:[%s1629_s8] sm:$0xff] %vm286_vm0, %v1066_v12 }

</bundles_post_ra>
